<compile_context>
chip_gen: v5e
topology: v5e:2x2
jax: 0.10.0
libtpu: 0.0.40
codegen_flags: <defaults>
</compile_context>

<pallas_src>
import math

import jax
import jax.numpy as jnp
from jax.experimental import pallas as pl
from jax.experimental.pallas import tpu as pltpu


# ---------------------------------------------------------------------------
# Kernels
# ---------------------------------------------------------------------------

def _fused_kernel(x_ref, w_ref, b_ref, out_ref):
    """out = x_flat @ W_big + bias  (one MXU pass, lane-dense store).

    x_ref  : (block_b, Cin*H*W)   raw NCHW image rows (natural flattening)
    w_ref  : (Cin*H*W, C*Dp)      fused conv+proj weight (VMEM-resident)
    b_ref  : (1, C*Dp)            folded conv+proj bias (f32)
    out_ref: (block_b, C*Dp)
    """
    acc = jnp.dot(x_ref[...], w_ref[...], preferred_element_type=jnp.float32)
    out_ref[...] = (acc + b_ref[...]).astype(out_ref.dtype)


def _two_stage_kernel(patches_ref, w1_ref, w2_ref, b_ref, out_ref):
    """Patch embedding + sequence projection, one MXU matmul each.

    patches_ref: (block_b*N, K)     im2col patch rows for block_b batches
    w1_ref     : (K, C)             conv weight
    w2_ref     : (N, Dp)            proj weight (lane-padded d_model)
    b_ref      : (block_b*C, Dp)    pre-tiled folded conv+proj bias (f32)
    out_ref    : (block_b*C, Dp)    rows indexed (batch, channel)
    """
    rows, Dp = out_ref.shape
    N = w2_ref.shape[0]
    C = w1_ref.shape[1]
    block_b = rows // C

    # Patch embedding for all block_b*N rows in one MXU pass (f32 accumulate).
    t = jnp.dot(patches_ref[...], w1_ref[...],
                preferred_element_type=jnp.float32)               # (block_b*N, C)

    # Regroup rows from (batch, patch) to (batch, channel): small XLU
    # transposes (free slot) feeding ONE lane-dense projection matmul and ONE
    # contiguous store (per-batch matmul loop collapsed per review).
    # TODO(synk): for very large row tiles, chunk this regroup (or stage `t`
    # in a VMEM scratch) to bound vreg pressure of the skinny (rows, C) tensor.
    t_cn = jnp.concatenate(
        [t[b * N:(b + 1) * N, :].T for b in range(block_b)], axis=0)  # (block_b*C, N)
    o = jnp.dot(t_cn.astype(w2_ref.dtype), w2_ref[...],
                preferred_element_type=jnp.float32)               # (block_b*C, Dp)
    out_ref[...] = (o + b_ref[...]).astype(out_ref.dtype)


# ---------------------------------------------------------------------------
# Helpers
# ---------------------------------------------------------------------------

def _round_up(x, m):
    return (x + m - 1) // m * m


def _vmem_budget_bytes():
    """~3/4 of per-core VMEM (64 MiB on v7x, 128 MiB on v5e/v6e)."""
    try:
        cap = int(pltpu.get_tpu_info().vmem_capacity_bytes)
    except Exception:
        cap = 64 * 1024 * 1024
    return (cap * 3) // 4


def _resident_spec(shape, single_buffer):
    """BlockSpec for grid-invariant operands (weights / bias): constant index
    map keeps the block VMEM-resident across grid steps; single-buffered when
    this JAX supports pipeline_mode, freeing VMEM for the data tiles."""
    ndim = len(shape)
    index_map = lambda i, _n=ndim: (0,) * _n
    if single_buffer:
        try:
            return pl.BlockSpec(shape, index_map, pipeline_mode=pl.Buffered(1))
        except Exception:
            pass
    return pl.BlockSpec(shape, index_map)


# ---------------------------------------------------------------------------
# Forward pass
# ---------------------------------------------------------------------------

def image_tokenizer_forward(x, conv_w, conv_b, lin_w, lin_b, patch_size, *,
                            use_bf16=False,
                            fused_weight_limit_bytes=32 * 1024 * 1024,
                            force_two_stage=False):
    """ImageTokenizer forward.

    x      : (B, 3, H, W) float32, NCHW
    conv_w : (C, 3, P, P)   (C == max_length)
    conv_b : (C,)
    lin_w  : (d_model, N)   PyTorch Linear weight (out, in), N == (H//P)*(W//P)
    lin_b  : (d_model,)
    returns: (B, C, d_model)
    """
    B, Cin, H, W = x.shape
    P = patch_size
    nH, nW = H // P, W // P
    N = nH * nW
    K = Cin * P * P
    C = conv_w.shape[0]
    D = lin_w.shape[0]
    out_dtype = x.dtype
    out_itm = x.dtype.itemsize

    # Minimal lane padding: pad d_model just enough that C * Dp is a multiple
    # of 128 (lane-dense stores).  Demo: Dp == d_model -> no un-pad copy.
    Dp = _round_up(D, 128 // math.gcd(C, 128))

    cdt = jnp.bfloat16 if use_bf16 else jnp.float32
    itm = 2 if use_bf16 else 4

    # proj weight (PyTorch (out, in)) -> (N, Dp) with zero-padded columns.
    w2 = jnp.zeros((N, Dp), jnp.float32).at[:, :D].set(lin_w.astype(jnp.float32).T)
    lin_b_p = jnp.zeros((Dp,), jnp.float32).at[:D].set(lin_b.astype(jnp.float32))
    # Folded bias: out[c, d] += conv_b[c] * sum_n w2[n, d] + lin_b[d]
    bias = (conv_b.astype(jnp.float32)[:, None] * jnp.sum(w2, axis=0)[None, :]
            + lin_b_p[None, :])                                        # (C, Dp)

    vmem_budget = _vmem_budget_bytes()
    CHW = Cin * H * W
    CDp = C * Dp

    fused_weight_bytes = CHW * CDp * itm
    use_fused = (not force_two_stage) and fused_weight_bytes <= fused_weight_limit_bytes

    if use_fused:
        # ----- fully fused single-matmul path (no patch-extraction HBM pass) -
        # W_big[(ic, i*P+ph, j*P+pw), (c, d)] = conv_w[c,ic,ph,pw] * w2[i*nW+j, d]
        # so the raw NCHW image (natural flattening -> free reshape) is the LHS.
        w1_r = conv_w.astype(jnp.float32).transpose(1, 2, 3, 0)        # (Cin,P,P,C)
        w2_r = w2.reshape(nH, nW, Dp)                                  # (nH,nW,Dp)
        w_big = jnp.einsum("aefc,ijd->aiejfcd", w1_r, w2_r).reshape(CHW, CDp)
        w_big = w_big.astype(cdt)
        bias_row = bias.reshape(1, CDp)
        x_flat = x.reshape(B, CHW).astype(cdt)

        # Batch tile sized against the VMEM budget (double-buffered in/out
        # tiles, single-buffered resident weights).
        per_row = 2 * (CHW * itm + CDp * out_itm)
        weight_bytes = fused_weight_bytes + CDp * 4
        tile_budget = max(vmem_budget - weight_bytes - (4 << 20), 8 * per_row)
        block_b = int(max(1, min(B, tile_budget // per_row)))
        if B >= 16:  # keep >= 2 'parallel' grid steps so both v7x TCs run
            block_b = min(block_b, max(8, ((B // 2) // 8) * 8))
        if block_b < B:
            block_b = min(B, max(8, (block_b // 8) * 8))   # sublane-legal block
        grid = (pl.cdiv(B, block_b),)

        vmem_limit = int(min(vmem_budget,
                             max(32 << 20,
                                 weight_bytes + block_b * per_row + (2 << 20))))

        def run(single_buffer):
            return pl.pallas_call(
                _fused_kernel,
                out_shape=jax.ShapeDtypeStruct((B, CDp), out_dtype),
                grid=grid,
                in_specs=[
                    pl.BlockSpec((block_b, CHW), lambda i: (i, 0)),
                    _resident_spec((CHW, CDp), single_buffer),
                    _resident_spec((1, CDp), single_buffer),
                ],
                out_specs=pl.BlockSpec((block_b, CDp), lambda i: (i, 0)),
                compiler_params=pltpu.CompilerParams(
                    dimension_semantics=("parallel",),
                    vmem_limit_bytes=vmem_limit),
            )(x_flat, w_big, bias_row)

        try:
            out = run(True)
        except Exception:   # JAX without single-buffered pipeline_mode support
            out = run(False)

        out = out.reshape(B, C, Dp)

    else:
        # ----- two-stage fallback for production-sized C * d_model -----------
        # TODO(synk): fuse patch extraction into this kernel too (row-strip
        # BlockSpecs over the raw NCHW image, or NHWC layout upstream) to drop
        # the extra HBM pass below.
        patches = (x.reshape(B, Cin, nH, P, nW, P)
                    .transpose(0, 2, 4, 1, 3, 5)
                    .reshape(B * N, K)).astype(cdt)
        w1 = conv_w.astype(jnp.float32).reshape(C, K).T.astype(cdt)     # (K, C)
        w2k = w2.astype(cdt)                                            # (N, Dp)

        # Row target: VMEM-budgeted, capped so the skinny (rows, C)
        # intermediate keeps vreg pressure sane.
        per_b = 2 * (N * K * itm + C * Dp * out_itm)
        weight_bytes = (K * C + N * Dp) * itm + C * Dp * 4
        tile_budget = max(vmem_budget - weight_bytes - (4 << 20), per_b)
        block_b = int(max(1, min(B, tile_budget // per_b)))
        block_b = min(block_b, max(1, 512 // N))
        if B >= 16:
            block_b = min(block_b, max(1, B // 2))
        # Block legality: row counts must be multiples of 8 sublanes and
        # block_b must divide B; a full-array block is always legal (handles
        # N % 8 != 0 / C % 8 != 0).
        while block_b > 1 and (B % block_b or (block_b * N) % 8 or (block_b * C) % 8):
            block_b -= 1
        if ((block_b * N) % 8 or (block_b * C) % 8) and B > 1:
            block_b = B
        grid = (B // block_b,)

        bias_tiled = jnp.tile(bias, (block_b, 1))                       # (block_b*C, Dp)

        vmem_limit = int(min(vmem_budget,
                             max(32 << 20,
                                 weight_bytes + block_b * per_b + (2 << 20))))

        def run(single_buffer):
            return pl.pallas_call(
                _two_stage_kernel,
                out_shape=jax.ShapeDtypeStruct((B * C, Dp), out_dtype),
                grid=grid,
                in_specs=[
                    pl.BlockSpec((block_b * N, K), lambda i: (i, 0)),
                    _resident_spec((K, C), single_buffer),
                    _resident_spec((N, Dp), single_buffer),
                    _resident_spec((block_b * C, Dp), single_buffer),
                ],
                out_specs=pl.BlockSpec((block_b * C, Dp), lambda i: (i, 0)),
                compiler_params=pltpu.CompilerParams(
                    dimension_semantics=("parallel",),
                    vmem_limit_bytes=vmem_limit),
            )(patches, w1, w2k, bias_tiled)

        try:
            out = run(True)
        except Exception:
            out = run(False)

        out = out.reshape(B, C, Dp)

    return out if Dp == D else out[:, :, :D]


# ---------------------------------------------------------------------------
# Reference + self-test
# ---------------------------------------------------------------------------

def _reference_forward(x, conv_w, conv_b, lin_w, lin_b, patch_size):
    """Pure-JAX reference matching the PyTorch module."""
    y = jax.lax.conv_general_dilated(
        x, conv_w,
        window_strides=(patch_size, patch_size),
        padding="VALID",
        dimension_numbers=("NCHW", "OIHW", "NCHW"),
    ) + conv_b.reshape(1, -1, 1, 1)
    B, C, Hn, Wn = y.shape
    y = y.reshape(B, C, Hn * Wn)
    return jnp.einsum("bcn,dn->bcd", y, lin_w) + lin_b


if __name__ == "__main__":
    # Small config consistent with the module.
    image_size = 16
    patch_size = 4
    max_length = 8          # conv out_channels == sequence length C
    d_model = 32
    B = 2
    num_seq = (image_size - patch_size) // patch_size + 1   # 4
    N = num_seq * num_seq                                   # 16

    key = jax.random.PRNGKey(0)
    kx, kcw, kcb, klw, klb = jax.random.split(key, 5)

    x = jax.random.normal(kx, (B, 3, image_size, image_size), dtype=jnp.float32)
    conv_w = jax.random.normal(kcw, (max_length, 3, patch_size, patch_size),
                               dtype=jnp.float32) * 0.05
    conv_b = jax.random.normal(kcb, (max_length,), dtype=jnp.float32) * 0.05
    lin_w = jax.random.normal(klw, (d_model, N), dtype=jnp.float32) * 0.1
    lin_b = jax.random.normal(klb, (d_model,), dtype=jnp.float32) * 0.1

    ref = _reference_forward(x, conv_w, conv_b, lin_w, lin_b, patch_size)

    # 1) Fused single-matmul path (default at these sizes), f32 operands.
    out = jax.block_until_ready(
        image_tokenizer_forward(x, conv_w, conv_b, lin_w, lin_b, patch_size))
    assert out.shape == (B, max_length, d_model), out.shape
    assert jnp.allclose(out, ref, atol=1e-3, rtol=1e-3), (
        float(jnp.max(jnp.abs(out - ref))))

    # 2) bf16-operand fused path (f32 MXU accumulation), loose check.
    out_bf = jax.block_until_ready(
        image_tokenizer_forward(x, conv_w, conv_b, lin_w, lin_b, patch_size,
                                use_bf16=True))
    assert jnp.allclose(out_bf, ref, atol=1e-1, rtol=1e-1), (
        float(jnp.max(jnp.abs(out_bf - ref))))

    # 3) Two-stage fallback (used at production sizes where the fused weight
    #    exceeds its VMEM budget); forced here so it stays exercised.
    out2 = jax.block_until_ready(
        image_tokenizer_forward(x, conv_w, conv_b, lin_w, lin_b, patch_size,
                                force_two_stage=True))
    assert out2.shape == (B, max_length, d_model), out2.shape
    assert jnp.allclose(out2, ref, atol=1e-3, rtol=1e-3), (
        float(jnp.max(jnp.abs(out2 - ref))))

    print("KERNEL_OK")
</pallas_src>

<mosaic_0001>
module attributes {stable_mosaic.version = 11 : i64} {
  func.func @_fused_kernel(%arg0: i32, %arg1: memref<2x768xf32, #tpu.memory_space<vmem>>, %arg2: memref<768x256xf32, #tpu.memory_space<vmem>>, %arg3: memref<1x256xf32, #tpu.memory_space<vmem>>, %arg4: memref<2x256xf32, #tpu.memory_space<vmem>>) attributes {dimension_semantics = [#tpu.dimension_semantics<parallel>], iteration_bounds = array<i64: 1>, scalar_prefetch = 0 : i64, scratch_operands = 0 : i64, tpu.core_type = #tpu.core_type<tc>, window_params = [{transform_indices = @transform_0, window_bounds = array<i64: 2, 768>}, {pipeline_mode = #tpu.pipeline_mode<synchronous>, transform_indices = @transform_1, window_bounds = array<i64: 768, 256>}, {pipeline_mode = #tpu.pipeline_mode<synchronous>, transform_indices = @transform_2, window_bounds = array<i64: 1, 256>}, {transform_indices = @transform_3, window_bounds = array<i64: 2, 256>}]} {
    %c0 = arith.constant 0 : index
    %c0_0 = arith.constant 0 : index
    %0 = vector.load %arg1[%c0, %c0_0] : memref<2x768xf32, #tpu.memory_space<vmem>>, vector<2x768xf32>
    %c0_1 = arith.constant 0 : index
    %c0_2 = arith.constant 0 : index
    %1 = vector.load %arg2[%c0_1, %c0_2] : memref<768x256xf32, #tpu.memory_space<vmem>>, vector<768x256xf32>
    %cst = arith.constant dense<0.000000e+00> : vector<2x256xf32>
    %2 = tpu.matmul %0, %1, %cst {dimension_numbers = #tpu.dot_dimension_numbers<[1], [0], [0], [1], [0, 0, 1, 1], [], []>} : vector<2x768xf32>, vector<768x256xf32>, vector<2x256xf32> -> vector<2x256xf32>
    %c0_3 = arith.constant 0 : index
    %c0_4 = arith.constant 0 : index
    %3 = vector.load %arg3[%c0_3, %c0_4] : memref<1x256xf32, #tpu.memory_space<vmem>>, vector<1x256xf32>
    %4 = vector.broadcast %3 : vector<1x256xf32> to vector<2x256xf32>
    %5 = arith.addf %2, %4 : vector<2x256xf32>
    %c0_5 = arith.constant 0 : index
    %c0_6 = arith.constant 0 : index
    %6 = vector.load %arg4[%c0_5, %c0_6] : memref<2x256xf32, #tpu.memory_space<vmem>>, vector<2x256xf32>
    tpu.vector_store %arg4[%c0_5, %c0_6], %5 {strides = array<i32>} : memref<2x256xf32, #tpu.memory_space<vmem>>, vector<2x256xf32>,
    return
  }
  func.func @transform_0(%arg0: i32) -> (i32, i32) {
    %c0_i32 = arith.constant 0 : i32
    %c0_i32_0 = arith.constant 0 : i32
    return %arg0, %c0_i32 : i32, i32
  }
  func.func @transform_1(%arg0: i32) -> (i32, i32) {
    %c0_i32 = arith.constant 0 : i32
    %c0_i32_0 = arith.constant 0 : i32
    %c0_i32_1 = arith.constant 0 : i32
    return %c0_i32, %c0_i32_0 : i32, i32
  }
  func.func @transform_2(%arg0: i32) -> (i32, i32) {
    %c0_i32 = arith.constant 0 : i32
    %c0_i32_0 = arith.constant 0 : i32
    %c0_i32_1 = arith.constant 0 : i32
    return %c0_i32, %c0_i32_0 : i32, i32
  }
  func.func @transform_3(%arg0: i32) -> (i32, i32) {
    %c0_i32 = arith.constant 0 : i32
    %c0_i32_0 = arith.constant 0 : i32
    return %arg0, %c0_i32 : i32, i32
  }
}

module attributes {stable_mosaic.version = 11 : i64} {
  func.func @_fused_kernel(%arg0: i32, %arg1: memref<2x768xf32, #tpu.memory_space<vmem>>, %arg2: memref<768x256xf32, #tpu.memory_space<vmem>>, %arg3: memref<1x256xf32, #tpu.memory_space<vmem>>, %arg4: memref<2x256xf32, #tpu.memory_space<vmem>>) attributes {dimension_semantics = [#tpu.dimension_semantics<parallel>], iteration_bounds = array<i64: 1>, scalar_prefetch = 0 : i64, scratch_operands = 0 : i64, tpu.core_type = #tpu.core_type<tc>, window_params = [{transform_indices = @transform_0, window_bounds = array<i64: 2, 768>}, {pipeline_mode = #tpu.pipeline_mode<synchronous>, transform_indices = @transform_1, window_bounds = array<i64: 768, 256>}, {pipeline_mode = #tpu.pipeline_mode<synchronous>, transform_indices = @transform_2, window_bounds = array<i64: 1, 256>}, {transform_indices = @transform_3, window_bounds = array<i64: 2, 256>}]} {
    %c0 = arith.constant 0 : index
    %c0_0 = arith.constant 0 : index
    %0 = vector.load %arg1[%c0, %c0_0] : memref<2x768xf32, #tpu.memory_space<vmem>>, vector<2x768xf32>
    %c0_1 = arith.constant 0 : index
    %c0_2 = arith.constant 0 : index
    %1 = vector.load %arg2[%c0_1, %c0_2] : memref<768x256xf32, #tpu.memory_space<vmem>>, vector<768x256xf32>
    %cst = arith.constant dense<0.000000e+00> : vector<2x256xf32>
    %2 = tpu.matmul %0, %1, %cst {dimension_numbers = #tpu.dot_dimension_numbers<[1], [0], [0], [1], [0, 0, 1, 1], [], []>} : vector<2x768xf32>, vector<768x256xf32>, vector<2x256xf32> -> vector<2x256xf32>
    %c0_3 = arith.constant 0 : index
    %c0_4 = arith.constant 0 : index
    %3 = vector.load %arg3[%c0_3, %c0_4] : memref<1x256xf32, #tpu.memory_space<vmem>>, vector<1x256xf32>
    %4 = vector.broadcast %3 : vector<1x256xf32> to vector<2x256xf32>
    %5 = arith.addf %2, %4 : vector<2x256xf32>
    %c0_5 = arith.constant 0 : index
    %c0_6 = arith.constant 0 : index
    %6 = vector.load %arg4[%c0_5, %c0_6] : memref<2x256xf32, #tpu.memory_space<vmem>>, vector<2x256xf32>
    tpu.vector_store %arg4[%c0_5, %c0_6], %5 {strides = array<i32>} : memref<2x256xf32, #tpu.memory_space<vmem>>, vector<2x256xf32>,
    return
  }
  func.func @transform_0(%arg0: i32) -> (i32, i32) {
    %c0_i32 = arith.constant 0 : i32
    %c0_i32_0 = arith.constant 0 : i32
    return %arg0, %c0_i32 : i32, i32
  }
  func.func @transform_1(%arg0: i32) -> (i32, i32) {
    %c0_i32 = arith.constant 0 : i32
    %c0_i32_0 = arith.constant 0 : i32
    %c0_i32_1 = arith.constant 0 : i32
    return %c0_i32, %c0_i32_0 : i32, i32
  }
  func.func @transform_2(%arg0: i32) -> (i32, i32) {
    %c0_i32 = arith.constant 0 : i32
    %c0_i32_0 = arith.constant 0 : i32
    %c0_i32_1 = arith.constant 0 : i32
    return %c0_i32, %c0_i32_0 : i32, i32
  }
  func.func @transform_3(%arg0: i32) -> (i32, i32) {
    %c0_i32 = arith.constant 0 : i32
    %c0_i32_0 = arith.constant 0 : i32
    return %arg0, %c0_i32 : i32, i32
  }
}

</mosaic_0001>

<bundles_post_ra>
// kernel: tpu_custom_call.1
= control target key start
LH: loop header
LB: loop body
LE: loop exit
PB: predicated region body
PF: predicated region fallthrough
CT: control target
= control target key end

     0   :  { %8 = vsyncpa [#allocation3], 0  ;;  %s710_s0 = inlined_call_operand.hbm [shape: f32[2,768], index: 0, kind: input, shape index: {}]   ;;  %s711_s1 = inlined_call_operand.hbm [shape: f32[768,256], index: 1, kind: input, shape index: {}]   ;;  %s712_s2 = inlined_call_operand.hbm [shape: f32[1,256], index: 2, kind: input, shape index: {}]   ;;  %s713_s3 = inlined_call_operand.hbm [shape: f32[2,256], index: 3, kind: output, shape index: {}]  }
   0x1   :  { %9 = vsyncpa [#allocation6], 0  ;;  %s26_s14 = sshll.u32 %s711_s1, 4  ;;  %s27_s14 = int_to_ptr.hbm [resolvable:$true] %s26_s14 }
   0x2   :  { %10 = vsyncpa [#allocation4], 0  ;;  %s648_s15 = smov [#allocation5]   ;;  %s16_s19 = sshll.u32 %s710_s0, 4  ;;  %s17_s19 = int_to_ptr.hbm [resolvable:$true] %s16_s19 }
   0x3   :  { %s28_s16 = sshll.u32 %s648_s15, 4  ;;  %s649_s20 = smov 256   ;;  %s29_s16 = int_to_ptr.vmem [resolvable:$true] %s28_s16 }
   0x4   :  { %s650_s21 = smov 16   ;;  %s651_s22 = smov [#allocation2]  }
   0x5   :  { %34 = dma.hbm_to_vmem [thread:$0]  %s27_s14, 24576, %s29_s16, [#allocation6], %s649_s20, %s649_s20, %s650_s21  }
   0x6   :  { %s18_s23 = sshll.u32 %s651_s22, 4  ;;  %s40_s26 = sshll.u32 %s712_s2, 4  ;;  %s19_s23 = int_to_ptr.vmem [resolvable:$true] %s18_s23  ;;  %s41_s26 = int_to_ptr.hbm [resolvable:$true] %s40_s26 }
   0x7   :  { %21 = dma.hbm_to_vmem [thread:$0]  %s17_s19, 192, %s19_s23, [#allocation3]  }
   0x8   :  { %s652_s1 = smov [#allocation7]  }
   0x9   :  { %s42_s27 = sshll.u32 %s652_s1, 4  ;;  %s43_s27 = int_to_ptr.vmem [resolvable:$true] %s42_s27 }
   0xa   :  { %45 = dma.hbm_to_vmem [thread:$0]  %s41_s26, 32, %s43_s27, [#allocation6]  }
   0xb   :  { %642 = dma.done.wait [#allocation3], 192  }
   0xc   :  { %643 = vsyncadd [#allocation3], 4294967104 }
   0xd   :  { %644 = dma.done.wait [#allocation6], 24608  }
   0xe   :  { %645 = vsyncadd [#allocation6], 4294942688  ;;  %v154_v0 = vld [vmem:[#allocation5 + $0x2f0] sm:$0xff]  ;;  %v152_v2 = vld [vmem:[#allocation5 + $0x2e0] sm:$0xff]  ;;  %s653_s0 = smov [#allocation8]   ;;  %s529_s30 = sshll.u32 %s713_s3, 4  ;;  %s530_s30 = int_to_ptr.hbm [resolvable:$true] %s529_s30 }
   0xf   :  { %v90_v1 = vld [vmem:[#allocation5 + $0xf0] sm:$0xff]  ;;  %315 = vmatpush.msra.mxu2 %v154_v0  ;;  %v88_v4 = vld [vmem:[#allocation5 + $0xe0] sm:$0xff]  ;;  %v91_v62 = vld [vmem:[#allocation5 + $0xf8] sm:$0xff]  ;;  %s527_s2 = sshll.u32 %s653_s0, 4  ;;  %vm518_vm0 = vcmask 1041408   ;;  %s528_s2 = int_to_ptr.vmem [resolvable:$true] %s527_s2 }
  0x10   :  { %275 = vmatpush.msra.mxu0 %v90_v1  ;;  %v186_v3 = vld [vmem:[#allocation5 + $0x3f0] sm:$0xff]  ;;  %v184_v7 = vld [vmem:[#allocation5 + $0x3e0] sm:$0xff]  ;;  %v123_v1 = vld [vmem:[#allocation5 + $0x1f8] sm:$0xff] }
  0x11   :  { %v122_v5 = vld [vmem:[#allocation5 + $0x1f0] sm:$0xff]  ;;  %335 = vmatpush.msra.mxu3 %v186_v3  ;;  %316 = vmatpush.msra.mxu2 %v152_v2  ;;  %v120_v9 = vld [vmem:[#allocation5 + $0x1e0] sm:$0xff]  ;;  %v89_v2 = vld [vmem:[#allocation5 + $0xe8] sm:$0xff] }
  0x12   :  { %295 = vmatpush.msra.mxu1 %v122_v5  ;;  %v150_v6 = vld [vmem:[#allocation5 + $0x2d0] sm:$0xff]  ;;  %276 = vmatpush.msra.mxu0 %v88_v4  ;;  %v148_v11 = vld [vmem:[#allocation5 + $0x2c0] sm:$0xff] }
  0x13   :  { %v86_v8 = vld [vmem:[#allocation5 + $0xd0] sm:$0xff]  ;;  %336 = vmatpush.msra.mxu3 %v184_v7  ;;  %v84_v12 = vld [vmem:[#allocation5 + $0xc0] sm:$0xff]  ;;  %317 = vmatpush.msra.mxu2 %v150_v6  ;;  %v87_v6 = vld [vmem:[#allocation5 + $0xd8] sm:$0xff] }
  0x14   :  { %v182_v10 = vld [vmem:[#allocation5 + $0x3d0] sm:$0xff]  ;;  %296 = vmatpush.msra.mxu1 %v120_v9  ;;  %277 = vmatpush.msra.mxu0 %v86_v8  ;;  %v180_v14 = vld [vmem:[#allocation5 + $0x3c0] sm:$0xff]  ;;  %v121_v7 = vld [vmem:[#allocation5 + $0x1e8] sm:$0xff] }
  0x15   :  { %v118_v13 = vld [vmem:[#allocation5 + $0x1d0] sm:$0xff]  ;;  %v116_v15 = vld [vmem:[#allocation5 + $0x1c0] sm:$0xff]  ;;  %337 = vmatpush.msra.mxu3 %v182_v10  ;;  %318 = vmatpush.msra.mxu2 %v148_v11  ;;  %v85_v10 = vld [vmem:[#allocation5 + $0xc8] sm:$0xff] }
  0x16   :  { %297 = vmatpush.msra.mxu1 %v118_v13  ;;  %v146_v16 = vld [vmem:[#allocation5 + $0x2b0] sm:$0xff]  ;;  %278 = vmatpush.msra.mxu0 %v84_v12  ;;  %v144_v20 = vld [vmem:[#allocation5 + $0x2a0] sm:$0xff]  ;;  %v119_v11 = vld [vmem:[#allocation5 + $0x1d8] sm:$0xff] }
  0x17   :  { %v82_v17 = vld [vmem:[#allocation5 + $0xb0] sm:$0xff]  ;;  %338 = vmatpush.msra.mxu3 %v180_v14  ;;  %v80_v21 = vld [vmem:[#allocation5 + $0xa0] sm:$0xff]  ;;  %319 = vmatpush.msra.mxu2 %v146_v16  ;;  %v83_v14 = vld [vmem:[#allocation5 + $0xb8] sm:$0xff] }
  0x18   :  { %v178_v18 = vld [vmem:[#allocation5 + $0x3b0] sm:$0xff]  ;;  %298 = vmatpush.msra.mxu1 %v116_v15  ;;  %279 = vmatpush.msra.mxu0 %v82_v17  ;;  %v176_v22 = vld [vmem:[#allocation5 + $0x3a0] sm:$0xff]  ;;  %v117_v15 = vld [vmem:[#allocation5 + $0x1c8] sm:$0xff] }
  0x19   :  { %v114_v19 = vld [vmem:[#allocation5 + $0x1b0] sm:$0xff]  ;;  %v112_v23 = vld [vmem:[#allocation5 + $0x1a0] sm:$0xff]  ;;  %339 = vmatpush.msra.mxu3 %v178_v18  ;;  %320 = vmatpush.msra.mxu2 %v144_v20  ;;  %v81_v18 = vld [vmem:[#allocation5 + $0xa8] sm:$0xff] }
  0x1a   :  { %299 = vmatpush.msra.mxu1 %v114_v19  ;;  %v142_v24 = vld [vmem:[#allocation5 + $0x290] sm:$0xff]  ;;  %280 = vmatpush.msra.mxu0 %v80_v21  ;;  %v140_v28 = vld [vmem:[#allocation5 + $0x280] sm:$0xff]  ;;  %v115_v19 = vld [vmem:[#allocation5 + $0x1b8] sm:$0xff] }
  0x1b   :  { %v78_v25 = vld [vmem:[#allocation5 + $0x90] sm:$0xff]  ;;  %340 = vmatpush.msra.mxu3 %v176_v22  ;;  %v76_v29 = vld [vmem:[#allocation5 + $0x80] sm:$0xff]  ;;  %321 = vmatpush.msra.mxu2 %v142_v24  ;;  %v79_v22 = vld [vmem:[#allocation5 + $0x98] sm:$0xff] }
  0x1c   :  { %v174_v26 = vld [vmem:[#allocation5 + $0x390] sm:$0xff]  ;;  %300 = vmatpush.msra.mxu1 %v112_v23  ;;  %281 = vmatpush.msra.mxu0 %v78_v25  ;;  %v172_v30 = vld [vmem:[#allocation5 + $0x380] sm:$0xff]  ;;  %v113_v23 = vld [vmem:[#allocation5 + $0x1a8] sm:$0xff] }
  0x1d   :  { %v110_v27 = vld [vmem:[#allocation5 + $0x190] sm:$0xff]  ;;  %v108_v31 = vld [vmem:[#allocation5 + $0x180] sm:$0xff]  ;;  %341 = vmatpush.msra.mxu3 %v174_v26  ;;  %322 = vmatpush.msra.mxu2 %v140_v28  ;;  %v111_v28 = vld [vmem:[#allocation5 + $0x198] sm:$0xff] }
  0x1e   :  { %301 = vmatpush.msra.mxu1 %v110_v27  ;;  %v138_v32 = vld [vmem:[#allocation5 + $0x270] sm:$0xff]  ;;  %282 = vmatpush.msra.mxu0 %v76_v29  ;;  %v136_v36 = vld [vmem:[#allocation5 + $0x260] sm:$0xff]  ;;  %v77_v27 = vld [vmem:[#allocation5 + $0x88] sm:$0xff] }
  0x1f   :  { %v74_v33 = vld [vmem:[#allocation5 + $0x70] sm:$0xff]  ;;  %342 = vmatpush.msra.mxu3 %v172_v30  ;;  %v72_v37 = vld [vmem:[#allocation5 + $0x60] sm:$0xff]  ;;  %323 = vmatpush.msra.mxu2 %v138_v32  ;;  %v109_v32 = vld [vmem:[#allocation5 + $0x188] sm:$0xff] }
  0x20   :  { %v170_v34 = vld [vmem:[#allocation5 + $0x370] sm:$0xff]  ;;  %302 = vmatpush.msra.mxu1 %v108_v31  ;;  %283 = vmatpush.msra.mxu0 %v74_v33  ;;  %v168_v38 = vld [vmem:[#allocation5 + $0x360] sm:$0xff]  ;;  %v75_v31 = vld [vmem:[#allocation5 + $0x78] sm:$0xff] }
  0x21   :  { %v106_v35 = vld [vmem:[#allocation5 + $0x170] sm:$0xff]  ;;  %v104_v39 = vld [vmem:[#allocation5 + $0x160] sm:$0xff]  ;;  %343 = vmatpush.msra.mxu3 %v170_v34  ;;  %324 = vmatpush.msra.mxu2 %v136_v36  ;;  %v107_v36 = vld [vmem:[#allocation5 + $0x178] sm:$0xff] }
  0x22   :  { %303 = vmatpush.msra.mxu1 %v106_v35  ;;  %v134_v40 = vld [vmem:[#allocation5 + $0x250] sm:$0xff]  ;;  %284 = vmatpush.msra.mxu0 %v72_v37  ;;  %v132_v44 = vld [vmem:[#allocation5 + $0x240] sm:$0xff]  ;;  %v73_v35 = vld [vmem:[#allocation5 + $0x68] sm:$0xff] }
  0x23   :  { %v70_v41 = vld [vmem:[#allocation5 + $0x50] sm:$0xff]  ;;  %344 = vmatpush.msra.mxu3 %v168_v38  ;;  %v68_v45 = vld [vmem:[#allocation5 + $0x40] sm:$0xff]  ;;  %325 = vmatpush.msra.mxu2 %v134_v40  ;;  %v71_v40 = vld [vmem:[#allocation5 + $0x58] sm:$0xff] }
  0x24   :  { %v166_v42 = vld [vmem:[#allocation5 + $0x350] sm:$0xff]  ;;  %304 = vmatpush.msra.mxu1 %v104_v39  ;;  %285 = vmatpush.msra.mxu0 %v70_v41  ;;  %v164_v46 = vld [vmem:[#allocation5 + $0x340] sm:$0xff]  ;;  %v59_v39 = vld [vmem:[#allocation2 + $0x8] sm:$0xf] }
  0x25   :  { %v102_v43 = vld [vmem:[#allocation5 + $0x150] sm:$0xff]  ;;  %v100_v47 = vld [vmem:[#allocation5 + $0x140] sm:$0xff]  ;;  %345 = vmatpush.msra.mxu3 %v166_v42  ;;  %326 = vmatpush.msra.mxu2 %v132_v44  ;;  %v105_v41 = vld [vmem:[#allocation5 + $0x168] sm:$0xff]  ;;  %262 = vst [vmem:[#allocation1 + $0x20] ss:$4 sm:$0xff] %v59_v39 }
  0x26   :  { %305 = vmatpush.msra.mxu1 %v102_v43  ;;  %v130_v48 = vld [vmem:[#allocation5 + $0x230] sm:$0xff]  ;;  %286 = vmatpush.msra.mxu0 %v68_v45  ;;  %v128_v52 = vld [vmem:[#allocation5 + $0x220] sm:$0xff]  ;;  %v69_v44 = vld [vmem:[#allocation5 + $0x48] sm:$0xff] }
  0x27   :  { %v66_v49 = vld [vmem:[#allocation5 + $0x30] sm:$0xff]  ;;  %346 = vmatpush.msra.mxu3 %v164_v46  ;;  %v64_v53 = vld [vmem:[#allocation5 + $0x20] sm:$0xff]  ;;  %327 = vmatpush.msra.mxu2 %v130_v48  ;;  %v103_v45 = vld [vmem:[#allocation5 + $0x158] sm:$0xff] }
  0x28   :  { %v162_v50 = vld [vmem:[#allocation5 + $0x330] sm:$0xff]  ;;  %306 = vmatpush.msra.mxu1 %v100_v47  ;;  %287 = vmatpush.msra.mxu0 %v66_v49  ;;  %v160_v54 = vld [vmem:[#allocation5 + $0x320] sm:$0xff]  ;;  %v67_v48 = vld [vmem:[#allocation5 + $0x38] sm:$0xff] }
  0x29   :  { %v98_v51 = vld [vmem:[#allocation5 + $0x130] sm:$0xff]  ;;  %v96_v55 = vld [vmem:[#allocation5 + $0x120] sm:$0xff]  ;;  %347 = vmatpush.msra.mxu3 %v162_v50  ;;  %328 = vmatpush.msra.mxu2 %v128_v52  ;;  %v101_v49 = vld [vmem:[#allocation5 + $0x148] sm:$0xff] }
  0x2a   :  { %307 = vmatpush.msra.mxu1 %v98_v51  ;;  %v126_v56 = vld [vmem:[#allocation5 + $0x210] sm:$0xff]  ;;  %288 = vmatpush.msra.mxu0 %v64_v53  ;;  %v124_v60 = vld [vmem:[#allocation5 + $0x200] sm:$0xff]  ;;  %v65_v52 = vld [vmem:[#allocation5 + $0x28] sm:$0xff] }
  0x2b   :  { %v62_v57 = vld [vmem:[#allocation5 + $0x10] sm:$0xff]  ;;  %348 = vmatpush.msra.mxu3 %v160_v54  ;;  %v60_v61 = vld [vmem:[#allocation5] sm:$0xff]  ;;  %329 = vmatpush.msra.mxu2 %v126_v56  ;;  %v99_v53 = vld [vmem:[#allocation5 + $0x138] sm:$0xff] }
  0x2c   :  { %v158_v58 = vld [vmem:[#allocation5 + $0x310] sm:$0xff]  ;;  %308 = vmatpush.msra.mxu1 %v96_v55  ;;  %289 = vmatpush.msra.mxu0 %v62_v57  ;;  %v156_v63 = vld [vmem:[#allocation5 + $0x300] sm:$0xff]  ;;  %v63_v56 = vld [vmem:[#allocation5 + $0x18] sm:$0xff] }
  0x2d   :  { %v94_v59 = vld [vmem:[#allocation5 + $0x110] sm:$0xff]  ;;  %349 = vmatpush.msra.mxu3 %v158_v58  ;;  %330 = vmatpush.msra.mxu2 %v124_v60  ;;  %v92_v3 = vld [vmem:[#allocation5 + $0x100] sm:$0xff]  ;;  %v97_v57 = vld [vmem:[#allocation5 + $0x128] sm:$0xff] }
  0x2e   :  { %309 = vmatpush.msra.mxu1 %v94_v59  ;;  %v218_v0 = vld [vmem:[#allocation5 + $0x4f0] sm:$0xff]  ;;  %290 = vmatpush.msra.mxu0 %v60_v61  ;;  %v216_v4 = vld [vmem:[#allocation5 + $0x4e0] sm:$0xff]  ;;  %v61_v60 = vld [vmem:[#allocation5 + $0x8] sm:$0xff] }
  0x2f   :  { %395 = vmatpush.msrb.mxu2 %v91_v62  ;;  %350 = vmatpush.msra.mxu3 %v156_v63  ;;  %v250_v5 = vld [vmem:[#allocation5 + $0x5f0] sm:$0xff]  ;;  %v248_v9 = vld [vmem:[#allocation5 + $0x5e0] sm:$0xff]  ;;  %v95_v61 = vld [vmem:[#allocation5 + $0x118] sm:$0xff] }
  0x30   :  { %355 = vmatpush.msrb.mxu0 %v218_v0  ;;  %310 = vmatpush.msra.mxu1 %v92_v3  ;;  %v214_v8 = vld [vmem:[#allocation5 + $0x4d0] sm:$0xff]  ;;  %v212_v12 = vld [vmem:[#allocation5 + $0x4c0] sm:$0xff]  ;;  %v219_v0 = vld [vmem:[#allocation5 + $0x4f8] sm:$0xff] }
  0x31   :  { %415 = vmatpush.msrb.mxu3 %v123_v1  ;;  %396 = vmatpush.msrb.mxu2 %v89_v2  ;;  %v246_v13 = vld [vmem:[#allocation5 + $0x5d0] sm:$0xff]  ;;  %v244_v17 = vld [vmem:[#allocation5 + $0x5c0] sm:$0xff]  ;;  %v93_v2 = vld [vmem:[#allocation5 + $0x108] sm:$0xff] }
  0x32   :  { %356 = vmatpush.msrb.mxu0 %v216_v4  ;;  %375 = vmatpush.msrb.mxu1 %v250_v5  ;;  %v210_v16 = vld [vmem:[#allocation5 + $0x4b0] sm:$0xff]  ;;  %v208_v20 = vld [vmem:[#allocation5 + $0x4a0] sm:$0xff]  ;;  %v155_v5 = vld [vmem:[#allocation5 + $0x2f8] sm:$0xff] }
  0x33   :  { %397 = vmatpush.msrb.mxu2 %v87_v6  ;;  %416 = vmatpush.msrb.mxu3 %v121_v7  ;;  %v242_v21 = vld [vmem:[#allocation5 + $0x5b0] sm:$0xff]  ;;  %v240_v26 = vld [vmem:[#allocation5 + $0x5a0] sm:$0xff]  ;;  %v217_v6 = vld [vmem:[#allocation5 + $0x4e8] sm:$0xff] }
  0x34   :  { %357 = vmatpush.msrb.mxu0 %v214_v8  ;;  %376 = vmatpush.msrb.mxu1 %v248_v9  ;;  %v58_v24 = vld [vmem:[#allocation2] sm:$0xff]  ;;  %v204_v29 = vld [vmem:[#allocation5 + $0x480] sm:$0xff]  ;;  %v153_v9 = vld [vmem:[#allocation5 + $0x2e8] sm:$0xff] }
  0x35   :  { %398 = vmatpush.msrb.mxu2 %v85_v10  ;;  %417 = vmatpush.msrb.mxu3 %v119_v11  ;;  %v206_v25 = vld [vmem:[#allocation5 + $0x490] sm:$0xff]  ;;  %260 = vst [vmem:[#allocation1] ss:$4 sm:$0xff] %v58_v24  ;;  %v236_v34 = vld [vmem:[#allocation5 + $0x580] sm:$0xff]  ;;  %v251_v7 = vld [vmem:[#allocation5 + $0x5f8] sm:$0xff] }
  0x36   :  { %358 = vmatpush.msrb.mxu0 %v212_v12  ;;  %377 = vmatpush.msrb.mxu1 %v246_v13  ;;  %v238_v30 = vld [vmem:[#allocation5 + $0x590] sm:$0xff]  ;;  %v200_v37 = vld [vmem:[#allocation5 + $0x460] sm:$0xff]  ;;  %v215_v11 = vld [vmem:[#allocation5 + $0x4d8] sm:$0xff] }
  0x37   :  { %399 = vmatpush.msrb.mxu2 %v83_v14  ;;  %418 = vmatpush.msrb.mxu3 %v117_v15  ;;  %v202_v33 = vld [vmem:[#allocation5 + $0x470] sm:$0xff]  ;;  %v232_v43 = vld [vmem:[#allocation5 + $0x560] sm:$0xff]  ;;  %v187_v12 = vld [vmem:[#allocation5 + $0x3f8] sm:$0xff] }
  0x38   :  { %359 = vmatpush.msrb.mxu0 %v210_v16  ;;  %378 = vmatpush.msrb.mxu1 %v244_v17  ;;  %v234_v38 = vld [vmem:[#allocation5 + $0x570] sm:$0xff]  ;;  %v196_v46 = vld [vmem:[#allocation5 + $0x440] sm:$0xff]  ;;  %v249_v13 = vld [vmem:[#allocation5 + $0x5e8] sm:$0xff] }
  0x39   :  { %400 = vmatpush.msrb.mxu2 %v81_v18  ;;  %419 = vmatpush.msrb.mxu3 %v115_v19  ;;  %v198_v42 = vld [vmem:[#allocation5 + $0x450] sm:$0xff]  ;;  %v228_v51 = vld [vmem:[#allocation5 + $0x540] sm:$0xff]  ;;  %v151_v14 = vld [vmem:[#allocation5 + $0x2d8] sm:$0xff] }
  0x3a   :  { %360 = vmatpush.msrb.mxu0 %v208_v20  ;;  %379 = vmatpush.msrb.mxu1 %v242_v21  ;;  %v230_v47 = vld [vmem:[#allocation5 + $0x550] sm:$0xff]  ;;  %v192_v54 = vld [vmem:[#allocation5 + $0x420] sm:$0xff]  ;;  %v213_v15 = vld [vmem:[#allocation5 + $0x4c8] sm:$0xff] }
  0x3b   :  { %401 = vmatpush.msrb.mxu2 %v79_v22  ;;  %420 = vmatpush.msrb.mxu3 %v113_v23  ;;  %v194_v50 = vld [vmem:[#allocation5 + $0x430] sm:$0xff]  ;;  %v224_v59 = vld [vmem:[#allocation5 + $0x520] sm:$0xff]  ;;  %v185_v16 = vld [vmem:[#allocation5 + $0x3e8] sm:$0xff] }
  0x3c   :  { %361 = vmatpush.msrb.mxu0 %v206_v25  ;;  %380 = vmatpush.msrb.mxu1 %v240_v26  ;;  %v226_v55 = vld [vmem:[#allocation5 + $0x530] sm:$0xff]  ;;  %v683_v62 = vld.sshfl [vmem:[#allocation1 + $0x10] sm:$0xff pattern:$0x73625140]  ;;  %v149_v18 = vld [vmem:[#allocation5 + $0x2c8] sm:$0xff] }
  0x3d   :  { %402 = vmatpush.msrb.mxu2 %v77_v27  ;;  %421 = vmatpush.msrb.mxu3 %v111_v28  ;;  %v190_v58 = vld [vmem:[#allocation5 + $0x410] sm:$0xff]  ;;  %v188_v63 = vld [vmem:[#allocation5 + $0x400] sm:$0xff]  ;;  %v247_v17 = vld [vmem:[#allocation5 + $0x5d8] sm:$0xff] }
  0x3e   :  { %362 = vmatpush.msrb.mxu0 %v204_v29  ;;  %381 = vmatpush.msrb.mxu1 %v238_v30  ;;  %v222_v1 = vld [vmem:[#allocation5 + $0x510] sm:$0xff]  ;;  %v688_v4 = vld.sshfl [vmem:[#allocation1 + $0x18] sm:$0xff pattern:$0x73625140]  ;;  %v211_v19 = vld [vmem:[#allocation5 + $0x4b8] sm:$0xff] }
  0x3f   :  { %403 = vmatpush.msrb.mxu2 %v75_v31  ;;  %422 = vmatpush.msrb.mxu3 %v109_v32  ;;  %v685_v3 = vld.sshfl [vmem:[#allocation1] sm:$0xff pattern:$0x73625140]  ;;  %v220_v8 = vld [vmem:[#allocation5 + $0x500] sm:$0xff]  ;;  %v183_v20 = vld [vmem:[#allocation5 + $0x3d8] sm:$0xff] }
  0x40   :  { %363 = vmatpush.msrb.mxu0 %v202_v33  ;;  %382 = vmatpush.msrb.mxu1 %v236_v34  ;;  %v692_v10 = vld.sshfl [vmem:[#allocation1 + $0x8] sm:$0xff pattern:$0x73625140]  ;;  %v245_v21 = vld [vmem:[#allocation5 + $0x5c8] sm:$0xff] }
  0x41   :  { %404 = vmatpush.msrb.mxu2 %v73_v35  ;;  %423 = vmatpush.msrb.mxu3 %v107_v36  ;;  %v695_v22 = vld.sshfl [vmem:[#allocation1 + $0x20] sm:$0xff pattern:$0x73625140]  ;;  %v147_v24 = vld [vmem:[#allocation5 + $0x2b8] sm:$0xff] }
  0x42   :  { %364 = vmatpush.msrb.mxu0 %v200_v37  ;;  %383 = vmatpush.msrb.mxu1 %v234_v38  ;;  %v209_v23 = vld [vmem:[#allocation5 + $0x4a8] sm:$0xff]  ;;  %v243_v26 = vld [vmem:[#allocation5 + $0x5b8] sm:$0xff] }
  0x43   :  { %405 = vmatpush.msrb.mxu2 %v71_v40  ;;  %424 = vmatpush.msrb.mxu3 %v105_v41  ;;  %v181_v25 = vld [vmem:[#allocation5 + $0x3c8] sm:$0xff]  ;;  %v697_v27 = vld.sshfl [vmem:[#allocation1 + $0x28] sm:$0xff pattern:$0x73625140] }
  0x44   :  { %365 = vmatpush.msrb.mxu0 %v198_v42  ;;  %384 = vmatpush.msrb.mxu1 %v232_v43  ;;  %v145_v28 = vld [vmem:[#allocation5 + $0x2a8] sm:$0xff]  ;;  %v179_v29 = vld [vmem:[#allocation5 + $0x3b8] sm:$0xff] }
  0x45   :  { %406 = vmatpush.msrb.mxu2 %v69_v44  ;;  %425 = vmatpush.msrb.mxu3 %v103_v45  ;;  %v207_v30 = vld [vmem:[#allocation5 + $0x498] sm:$0xff]  ;;  %v241_v31 = vld [vmem:[#allocation5 + $0x5a8] sm:$0xff] }
  0x46   :  { %366 = vmatpush.msrb.mxu0 %v196_v46  ;;  %385 = vmatpush.msrb.mxu1 %v230_v47  ;;  %v143_v32 = vld [vmem:[#allocation5 + $0x298] sm:$0xff]  ;;  %v177_v33 = vld [vmem:[#allocation5 + $0x3a8] sm:$0xff] }
  0x47   :  { %407 = vmatpush.msrb.mxu2 %v67_v48  ;;  %426 = vmatpush.msrb.mxu3 %v101_v49  ;;  %v205_v34 = vld [vmem:[#allocation5 + $0x488] sm:$0xff]  ;;  %v239_v35 = vld [vmem:[#allocation5 + $0x598] sm:$0xff] }
  0x48   :  { %367 = vmatpush.msrb.mxu0 %v194_v50  ;;  %386 = vmatpush.msrb.mxu1 %v228_v51  ;;  %v141_v36 = vld [vmem:[#allocation5 + $0x288] sm:$0xff]  ;;  %v175_v37 = vld [vmem:[#allocation5 + $0x398] sm:$0xff] }
  0x49   :  { %408 = vmatpush.msrb.mxu2 %v65_v52  ;;  %427 = vmatpush.msrb.mxu3 %v99_v53  ;;  %v203_v38 = vld [vmem:[#allocation5 + $0x478] sm:$0xff]  ;;  %v237_v39 = vld [vmem:[#allocation5 + $0x588] sm:$0xff] }
  0x4a   :  { %368 = vmatpush.msrb.mxu0 %v192_v54  ;;  %387 = vmatpush.msrb.mxu1 %v226_v55  ;;  %v139_v40 = vld [vmem:[#allocation5 + $0x278] sm:$0xff]  ;;  %v173_v41 = vld [vmem:[#allocation5 + $0x388] sm:$0xff] }
  0x4b   :  { %409 = vmatpush.msrb.mxu2 %v63_v56  ;;  %428 = vmatpush.msrb.mxu3 %v97_v57  ;;  %v201_v42 = vld [vmem:[#allocation5 + $0x468] sm:$0xff]  ;;  %v235_v43 = vld [vmem:[#allocation5 + $0x578] sm:$0xff] }
  0x4c   :  { %369 = vmatpush.msrb.mxu0 %v190_v58  ;;  %388 = vmatpush.msrb.mxu1 %v224_v59  ;;  %v137_v44 = vld [vmem:[#allocation5 + $0x268] sm:$0xff]  ;;  %v171_v45 = vld [vmem:[#allocation5 + $0x378] sm:$0xff] }
  0x4d   :  { %410 = vmatpush.msrb.mxu2 %v61_v60  ;;  %429 = vmatpush.msrb.mxu3 %v95_v61  ;;  %v199_v46 = vld [vmem:[#allocation5 + $0x458] sm:$0xff]  ;;  %v233_v47 = vld [vmem:[#allocation5 + $0x568] sm:$0xff] }
  0x4e   :  { %331 = vmatmul.f32.vlgmr.msra.gmra.mxu2 %v683_v62  ;;  %370 = vmatpush.msrb.mxu0 %v188_v63  ;;  %v135_v48 = vld [vmem:[#allocation5 + $0x258] sm:$0xff]  ;;  %v169_v49 = vld [vmem:[#allocation5 + $0x368] sm:$0xff] }
  0x4f   :  { %475 = vmatpush.msra.mxu2 %v219_v0  ;;  %389 = vmatpush.msrb.mxu1 %v222_v1  ;;  %v197_v50 = vld [vmem:[#allocation5 + $0x448] sm:$0xff]  ;;  %v231_v51 = vld [vmem:[#allocation5 + $0x558] sm:$0xff] }
  0x50   :  { %430 = vmatpush.msrb.mxu3 %v93_v2  ;;  %291 = vmatmul.f32.vlgmr.msra.gmra.mxu0 %v685_v3  ;;  %v133_v52 = vld [vmem:[#allocation5 + $0x248] sm:$0xff]  ;;  %v167_v53 = vld [vmem:[#allocation5 + $0x358] sm:$0xff] }
  0x51   :  { %351 = vmatmul.f32.vlgmr.msra.gmra.mxu3 %v688_v4  ;;  %435 = vmatpush.msra.mxu0 %v155_v5  ;;  %v195_v54 = vld [vmem:[#allocation5 + $0x438] sm:$0xff]  ;;  %v229_v55 = vld [vmem:[#allocation5 + $0x548] sm:$0xff] }
  0x52   :  { %476 = vmatpush.msra.mxu2 %v217_v6  ;;  %495 = vmatpush.msra.mxu3 %v251_v7  ;;  %v131_v56 = vld [vmem:[#allocation5 + $0x238] sm:$0xff]  ;;  %v165_v57 = vld [vmem:[#allocation5 + $0x348] sm:$0xff] }
  0x53   :  { %390 = vmatpush.msrb.mxu1 %v220_v8  ;;  %436 = vmatpush.msra.mxu0 %v153_v9  ;;  %v193_v58 = vld [vmem:[#allocation5 + $0x428] sm:$0xff]  ;;  %v227_v59 = vld [vmem:[#allocation5 + $0x538] sm:$0xff] }
  0x54   :  { %311 = vmatmul.f32.vlgmr.msra.gmra.mxu1 %v692_v10  ;;  %477 = vmatpush.msra.mxu2 %v215_v11  ;;  %v129_v60 = vld [vmem:[#allocation5 + $0x228] sm:$0xff]  ;;  %v163_v61 = vld [vmem:[#allocation5 + $0x338] sm:$0xff] }
  0x55   :  { %455 = vmatpush.msra.mxu1 %v187_v12  ;;  %496 = vmatpush.msra.mxu3 %v249_v13  ;;  %v191_v63 = vld [vmem:[#allocation5 + $0x418] sm:$0xff]  ;;  %v225_v0 = vld [vmem:[#allocation5 + $0x528] sm:$0xff] }
  0x56   :  { %437 = vmatpush.msra.mxu0 %v151_v14  ;;  %478 = vmatpush.msra.mxu2 %v213_v15  ;;  %v127_v1 = vld [vmem:[#allocation5 + $0x218] sm:$0xff]  ;;  %v161_v2 = vld [vmem:[#allocation5 + $0x328] sm:$0xff] }
  0x57   :  { %456 = vmatpush.msra.mxu1 %v185_v16  ;;  %497 = vmatpush.msra.mxu3 %v247_v17  ;;  %v223_v5 = vld [vmem:[#allocation5 + $0x518] sm:$0xff]  ;;  %v125_v6 = vld [vmem:[#allocation5 + $0x208] sm:$0xff] }
  0x58   :  { %438 = vmatpush.msra.mxu0 %v149_v18  ;;  %479 = vmatpush.msra.mxu2 %v211_v19  ;;  %v159_v7 = vld [vmem:[#allocation5 + $0x318] sm:$0xff]  ;;  %v221_v8 = vld [vmem:[#allocation5 + $0x508] sm:$0xff] }
  0x59   :  { %457 = vmatpush.msra.mxu1 %v183_v20  ;;  %498 = vmatpush.msra.mxu3 %v245_v21  ;;  %v157_v9 = vld [vmem:[#allocation5 + $0x308] sm:$0xff] }
  0x5a   :  { %371 = vmatmul.f32.vlgmr.msrb.gmra.mxu0 %v695_v22  ;;  %480 = vmatpush.msra.mxu2 %v209_v23 }
  0x5b   :  { %439 = vmatpush.msra.mxu0 %v147_v24  ;;  %458 = vmatpush.msra.mxu1 %v181_v25 }
  0x5c   :  { %499 = vmatpush.msra.mxu3 %v243_v26  ;;  %391 = vmatmul.f32.vlgmr.msrb.gmra.mxu1 %v697_v27 }
  0x5d   :  { %440 = vmatpush.msra.mxu0 %v145_v28  ;;  %459 = vmatpush.msra.mxu1 %v179_v29 }
  0x5e   :  { %481 = vmatpush.msra.mxu2 %v207_v30  ;;  %500 = vmatpush.msra.mxu3 %v241_v31 }
  0x5f   :  { %441 = vmatpush.msra.mxu0 %v143_v32  ;;  %460 = vmatpush.msra.mxu1 %v177_v33 }
  0x60   :  { %482 = vmatpush.msra.mxu2 %v205_v34  ;;  %501 = vmatpush.msra.mxu3 %v239_v35 }
  0x61   :  { %442 = vmatpush.msra.mxu0 %v141_v36  ;;  %461 = vmatpush.msra.mxu1 %v175_v37 }
  0x62   :  { %483 = vmatpush.msra.mxu2 %v203_v38  ;;  %502 = vmatpush.msra.mxu3 %v237_v39 }
  0x63   :  { %443 = vmatpush.msra.mxu0 %v139_v40  ;;  %462 = vmatpush.msra.mxu1 %v173_v41 }
  0x64   :  { %484 = vmatpush.msra.mxu2 %v201_v42  ;;  %503 = vmatpush.msra.mxu3 %v235_v43 }
  0x65   :  { %444 = vmatpush.msra.mxu0 %v137_v44  ;;  %463 = vmatpush.msra.mxu1 %v171_v45 }
  0x66   :  { %485 = vmatpush.msra.mxu2 %v199_v46  ;;  %504 = vmatpush.msra.mxu3 %v233_v47 }
  0x67   :  { %445 = vmatpush.msra.mxu0 %v135_v48  ;;  %464 = vmatpush.msra.mxu1 %v169_v49 }
  0x68   :  { %486 = vmatpush.msra.mxu2 %v197_v50  ;;  %505 = vmatpush.msra.mxu3 %v231_v51 }
  0x69   :  { %411 = vmatmul.f32.vlgmr.msrb.gmra.mxu2 %v685_v3  ;;  %446 = vmatpush.msra.mxu0 %v133_v52  ;;  %v189_v3 = vld [vmem:[#allocation5 + $0x408] sm:$0xff] }
  0x6a   :  { %465 = vmatpush.msra.mxu1 %v167_v53  ;;  %487 = vmatpush.msra.mxu2 %v195_v54 }
  0x6b   :  { %506 = vmatpush.msra.mxu3 %v229_v55  ;;  %447 = vmatpush.msra.mxu0 %v131_v56 }
  0x6c   :  { %431 = vmatmul.f32.vlgmr.msrb.gmra.mxu3 %v692_v10  ;;  %466 = vmatpush.msra.mxu1 %v165_v57  ;;  %v252_v10 = vld [vmem:[#allocation7] sm:$0x3] }
  0x6d   :  { %488 = vmatpush.msra.mxu2 %v193_v58  ;;  %507 = vmatpush.msra.mxu3 %v227_v59  ;;  %v254_v13 = vperm.slane %v252_v10, 0  ;;  %v255_v18 = vperm.slane %v252_v10, 1 }
  0x6e   :  { %448 = vmatpush.msra.mxu0 %v129_v60  ;;  %467 = vmatpush.msra.mxu1 %v163_v61 }
  0x6f   :  { %489 = vmatpush.msra.mxu2 %v191_v63  ;;  %508 = vmatpush.msra.mxu3 %v225_v0 }
  0x70   :  { %449 = vmatpush.msra.mxu0 %v127_v1  ;;  %468 = vmatpush.msra.mxu1 %v161_v2 }
  0x71   :  { %490 = vmatpush.msra.mxu2 %v189_v3  ;;  %509 = vmatpush.msra.mxu3 %v223_v5 }
  0x72   :  { %491 = vmatmul.f32.vlgmr.msra.gmra.mxu2 %v695_v22  ;;  %450 = vmatpush.msra.mxu0 %v125_v6 }
  0x73   :  { %469 = vmatpush.msra.mxu1 %v159_v7  ;;  %510 = vmatpush.msra.mxu3 %v221_v8 }
  0x74   :  { %451 = vmatmul.f32.vlgmr.msra.gmra.mxu0 %v683_v62  ;;  %511 = vmatmul.f32.vlgmr.msra.gmra.mxu3 %v697_v27 }
  0x75   :  { %470 = vmatpush.msra.mxu1 %v157_v9 }
  0x76   :  { %471 = vmatmul.f32.vlgmr.msra.gmra.mxu1 %v688_v4 }
  0xcd   :  { %v292_v11 = vpop.f32.mrf.mxu0 }
  0xce   :  { %v293_v15 = vadd.f32 %v292_v11, %v254_v13 }
  0xd1   :  { %v312_v12 = vpop.f32.mrf.mxu1  ;;  %v332_v14 = vpop.f32.mrf.mxu2 }
  0xd2   :  { %v313_v19 = vadd.f32 %v312_v12, %v293_v15 }
  0xd4   :  { %v352_v16 = vpop.f32.mrf.mxu3  ;;  %v333_v23 = vadd.f32 %v332_v14, %v313_v19 }
  0xd6   :  { %v353_v26 = vadd.f32 %v352_v16, %v333_v23 }
  0xd7   :  { %v372_v17 = vpop.f32.mrf.mxu0 }
  0xd8   :  { %v373_v30 = vadd.f32 %v372_v17, %v353_v26 }
  0xd9   :  { %v392_v20 = vpop.f32.mrf.mxu1 }
  0xda   :  { %v393_v34 = vadd.f32 %v392_v20, %v373_v30 }
  0xec   :  { %v412_v21 = vpop.f32.mrf.mxu2 }
  0xed   :  { %v413_v22 = vadd.f32 %v412_v21, %v255_v18 }
  0xef   :  { %v432_v62 = vpop.f32.mrf.mxu3 }
  0xf0   :  { %v433_v24 = vadd.f32 %v432_v62, %v413_v22 }
  0xf1   :  { %v452_v25 = vpop.f32.mrf.mxu0 }
  0xf2   :  { %v453_v27 = vadd.f32 %v452_v25, %v433_v24 }
  0xf3   :  { %v472_v4 = vpop.f32.mrf.mxu1 }
  0xf4   :  { %v473_v28 = vadd.f32 %v472_v4, %v453_v27 }
  0xf5   :  { %v492_v29 = vpop.f32.mrf.mxu2 }
  0xf6   :  { %v493_v31 = vadd.f32 %v492_v29, %v473_v28 }
  0xf7   :  { %v512_v32 = vpop.f32.mrf.mxu3 }
  0xf8   :  { %v513_v33 = vadd.f32 %v512_v32, %v493_v31 }
  0xfa   :  { %v517_v35 = vrot.slane %v513_v33, 6 }
  0xfc   :  { %v519_v36 = vsel %vm518_vm0, %v393_v34, %v517_v35 }
  0xfd   :  { %521 = vst [vmem:[#allocation8] sm:$0xf] %v519_v36 }
  0xfe   :  { %532 = dma.vmem_to_hbm [thread:$0]  %s528_s2, 64, %s530_s30, [#allocation4]  }
  0xff   :  { %646 = dma.done.wait [#allocation4], 64  }
 0x100   :  { %647 = vsyncadd [#allocation4], 4294967232 }
 0x101   :  { %537 = vsyncpa [#allocation3], 1 }
 0x102   :  { %538 = vsyncpa [#allocation6], 1 }
 0x103   :  { %539 = vsyncpa [#allocation4], 1 }

// kernel: tpu_custom_call.1
= control target key start
LH: loop header
LB: loop body
LE: loop exit
PB: predicated region body
PF: predicated region fallthrough
CT: control target
= control target key end

     0   :  { %8 = vsyncpa [#allocation3], 0  ;;  %s710_s0 = inlined_call_operand.hbm [shape: f32[2,768], index: 0, kind: input, shape index: {}]   ;;  %s711_s1 = inlined_call_operand.hbm [shape: f32[768,256], index: 1, kind: input, shape index: {}]   ;;  %s712_s2 = inlined_call_operand.hbm [shape: f32[1,256], index: 2, kind: input, shape index: {}]   ;;  %s713_s3 = inlined_call_operand.hbm [shape: f32[2,256], index: 3, kind: output, shape index: {}]  }
   0x1   :  { %9 = vsyncpa [#allocation6], 0  ;;  %s26_s14 = sshll.u32 %s711_s1, 4  ;;  %s27_s14 = int_to_ptr.hbm [resolvable:$true] %s26_s14 }
   0x2   :  { %10 = vsyncpa [#allocation4], 0  ;;  %s648_s15 = smov [#allocation5]   ;;  %s16_s19 = sshll.u32 %s710_s0, 4  ;;  %s17_s19 = int_to_ptr.hbm [resolvable:$true] %s16_s19 }
   0x3   :  { %s28_s16 = sshll.u32 %s648_s15, 4  ;;  %s649_s20 = smov 256   ;;  %s29_s16 = int_to_ptr.vmem [resolvable:$true] %s28_s16 }
   0x4   :  { %s650_s21 = smov 16   ;;  %s651_s22 = smov [#allocation2]  }
   0x5   :  { %34 = dma.hbm_to_vmem [thread:$0]  %s27_s14, 24576, %s29_s16, [#allocation6], %s649_s20, %s649_s20, %s650_s21  }
   0x6   :  { %s18_s23 = sshll.u32 %s651_s22, 4  ;;  %s40_s26 = sshll.u32 %s712_s2, 4  ;;  %s19_s23 = int_to_ptr.vmem [resolvable:$true] %s18_s23  ;;  %s41_s26 = int_to_ptr.hbm [resolvable:$true] %s40_s26 }
   0x7   :  { %21 = dma.hbm_to_vmem [thread:$0]  %s17_s19, 192, %s19_s23, [#allocation3]  }
   0x8   :  { %s652_s1 = smov [#allocation7]  }
   0x9   :  { %s42_s27 = sshll.u32 %s652_s1, 4  ;;  %s43_s27 = int_to_ptr.vmem [resolvable:$true] %s42_s27 }
   0xa   :  { %45 = dma.hbm_to_vmem [thread:$0]  %s41_s26, 32, %s43_s27, [#allocation6]  }
   0xb   :  { %642 = dma.done.wait [#allocation3], 192  }
   0xc   :  { %643 = vsyncadd [#allocation3], 4294967104 }
   0xd   :  { %644 = dma.done.wait [#allocation6], 24608  }
   0xe   :  { %645 = vsyncadd [#allocation6], 4294942688  ;;  %v154_v0 = vld [vmem:[#allocation5 + $0x2f0] sm:$0xff]  ;;  %v152_v2 = vld [vmem:[#allocation5 + $0x2e0] sm:$0xff]  ;;  %s653_s0 = smov [#allocation8]   ;;  %s529_s30 = sshll.u32 %s713_s3, 4  ;;  %s530_s30 = int_to_ptr.hbm [resolvable:$true] %s529_s30 }
   0xf   :  { %v90_v1 = vld [vmem:[#allocation5 + $0xf0] sm:$0xff]  ;;  %315 = vmatpush.msra.mxu2 %v154_v0  ;;  %v88_v4 = vld [vmem:[#allocation5 + $0xe0] sm:$0xff]  ;;  %v91_v62 = vld [vmem:[#allocation5 + $0xf8] sm:$0xff]  ;;  %s527_s2 = sshll.u32 %s653_s0, 4  ;;  %vm518_vm0 = vcmask 1041408   ;;  %s528_s2 = int_to_ptr.vmem [resolvable:$true] %s527_s2 }
  0x10   :  { %275 = vmatpush.msra.mxu0 %v90_v1  ;;  %v186_v3 = vld [vmem:[#allocation5 + $0x3f0] sm:$0xff]  ;;  %v184_v7 = vld [vmem:[#allocation5 + $0x3e0] sm:$0xff]  ;;  %v123_v1 = vld [vmem:[#allocation5 + $0x1f8] sm:$0xff] }
  0x11   :  { %v122_v5 = vld [vmem:[#allocation5 + $0x1f0] sm:$0xff]  ;;  %335 = vmatpush.msra.mxu3 %v186_v3  ;;  %316 = vmatpush.msra.mxu2 %v152_v2  ;;  %v120_v9 = vld [vmem:[#allocation5 + $0x1e0] sm:$0xff]  ;;  %v89_v2 = vld [vmem:[#allocation5 + $0xe8] sm:$0xff] }
  0x12   :  { %295 = vmatpush.msra.mxu1 %v122_v5  ;;  %v150_v6 = vld [vmem:[#allocation5 + $0x2d0] sm:$0xff]  ;;  %276 = vmatpush.msra.mxu0 %v88_v4  ;;  %v148_v11 = vld [vmem:[#allocation5 + $0x2c0] sm:$0xff] }
  0x13   :  { %v86_v8 = vld [vmem:[#allocation5 + $0xd0] sm:$0xff]  ;;  %336 = vmatpush.msra.mxu3 %v184_v7  ;;  %v84_v12 = vld [vmem:[#allocation5 + $0xc0] sm:$0xff]  ;;  %317 = vmatpush.msra.mxu2 %v150_v6  ;;  %v87_v6 = vld [vmem:[#allocation5 + $0xd8] sm:$0xff] }
  0x14   :  { %v182_v10 = vld [vmem:[#allocation5 + $0x3d0] sm:$0xff]  ;;  %296 = vmatpush.msra.mxu1 %v120_v9  ;;  %277 = vmatpush.msra.mxu0 %v86_v8  ;;  %v180_v14 = vld [vmem:[#allocation5 + $0x3c0] sm:$0xff]  ;;  %v121_v7 = vld [vmem:[#allocation5 + $0x1e8] sm:$0xff] }
  0x15   :  { %v118_v13 = vld [vmem:[#allocation5 + $0x1d0] sm:$0xff]  ;;  %v116_v15 = vld [vmem:[#allocation5 + $0x1c0] sm:$0xff]  ;;  %337 = vmatpush.msra.mxu3 %v182_v10  ;;  %318 = vmatpush.msra.mxu2 %v148_v11  ;;  %v85_v10 = vld [vmem:[#allocation5 + $0xc8] sm:$0xff] }
  0x16   :  { %297 = vmatpush.msra.mxu1 %v118_v13  ;;  %v146_v16 = vld [vmem:[#allocation5 + $0x2b0] sm:$0xff]  ;;  %278 = vmatpush.msra.mxu0 %v84_v12  ;;  %v144_v20 = vld [vmem:[#allocation5 + $0x2a0] sm:$0xff]  ;;  %v119_v11 = vld [vmem:[#allocation5 + $0x1d8] sm:$0xff] }
  0x17   :  { %v82_v17 = vld [vmem:[#allocation5 + $0xb0] sm:$0xff]  ;;  %338 = vmatpush.msra.mxu3 %v180_v14  ;;  %v80_v21 = vld [vmem:[#allocation5 + $0xa0] sm:$0xff]  ;;  %319 = vmatpush.msra.mxu2 %v146_v16  ;;  %v83_v14 = vld [vmem:[#allocation5 + $0xb8] sm:$0xff] }
  0x18   :  { %v178_v18 = vld [vmem:[#allocation5 + $0x3b0] sm:$0xff]  ;;  %298 = vmatpush.msra.mxu1 %v116_v15  ;;  %279 = vmatpush.msra.mxu0 %v82_v17  ;;  %v176_v22 = vld [vmem:[#allocation5 + $0x3a0] sm:$0xff]  ;;  %v117_v15 = vld [vmem:[#allocation5 + $0x1c8] sm:$0xff] }
  0x19   :  { %v114_v19 = vld [vmem:[#allocation5 + $0x1b0] sm:$0xff]  ;;  %v112_v23 = vld [vmem:[#allocation5 + $0x1a0] sm:$0xff]  ;;  %339 = vmatpush.msra.mxu3 %v178_v18  ;;  %320 = vmatpush.msra.mxu2 %v144_v20  ;;  %v81_v18 = vld [vmem:[#allocation5 + $0xa8] sm:$0xff] }
  0x1a   :  { %299 = vmatpush.msra.mxu1 %v114_v19  ;;  %v142_v24 = vld [vmem:[#allocation5 + $0x290] sm:$0xff]  ;;  %280 = vmatpush.msra.mxu0 %v80_v21  ;;  %v140_v28 = vld [vmem:[#allocation5 + $0x280] sm:$0xff]  ;;  %v115_v19 = vld [vmem:[#allocation5 + $0x1b8] sm:$0xff] }
  0x1b   :  { %v78_v25 = vld [vmem:[#allocation5 + $0x90] sm:$0xff]  ;;  %340 = vmatpush.msra.mxu3 %v176_v22  ;;  %v76_v29 = vld [vmem:[#allocation5 + $0x80] sm:$0xff]  ;;  %321 = vmatpush.msra.mxu2 %v142_v24  ;;  %v79_v22 = vld [vmem:[#allocation5 + $0x98] sm:$0xff] }
  0x1c   :  { %v174_v26 = vld [vmem:[#allocation5 + $0x390] sm:$0xff]  ;;  %300 = vmatpush.msra.mxu1 %v112_v23  ;;  %281 = vmatpush.msra.mxu0 %v78_v25  ;;  %v172_v30 = vld [vmem:[#allocation5 + $0x380] sm:$0xff]  ;;  %v113_v23 = vld [vmem:[#allocation5 + $0x1a8] sm:$0xff] }
  0x1d   :  { %v110_v27 = vld [vmem:[#allocation5 + $0x190] sm:$0xff]  ;;  %v108_v31 = vld [vmem:[#allocation5 + $0x180] sm:$0xff]  ;;  %341 = vmatpush.msra.mxu3 %v174_v26  ;;  %322 = vmatpush.msra.mxu2 %v140_v28  ;;  %v111_v28 = vld [vmem:[#allocation5 + $0x198] sm:$0xff] }
  0x1e   :  { %301 = vmatpush.msra.mxu1 %v110_v27  ;;  %v138_v32 = vld [vmem:[#allocation5 + $0x270] sm:$0xff]  ;;  %282 = vmatpush.msra.mxu0 %v76_v29  ;;  %v136_v36 = vld [vmem:[#allocation5 + $0x260] sm:$0xff]  ;;  %v77_v27 = vld [vmem:[#allocation5 + $0x88] sm:$0xff] }
  0x1f   :  { %v74_v33 = vld [vmem:[#allocation5 + $0x70] sm:$0xff]  ;;  %342 = vmatpush.msra.mxu3 %v172_v30  ;;  %v72_v37 = vld [vmem:[#allocation5 + $0x60] sm:$0xff]  ;;  %323 = vmatpush.msra.mxu2 %v138_v32  ;;  %v109_v32 = vld [vmem:[#allocation5 + $0x188] sm:$0xff] }
  0x20   :  { %v170_v34 = vld [vmem:[#allocation5 + $0x370] sm:$0xff]  ;;  %302 = vmatpush.msra.mxu1 %v108_v31  ;;  %283 = vmatpush.msra.mxu0 %v74_v33  ;;  %v168_v38 = vld [vmem:[#allocation5 + $0x360] sm:$0xff]  ;;  %v75_v31 = vld [vmem:[#allocation5 + $0x78] sm:$0xff] }
  0x21   :  { %v106_v35 = vld [vmem:[#allocation5 + $0x170] sm:$0xff]  ;;  %v104_v39 = vld [vmem:[#allocation5 + $0x160] sm:$0xff]  ;;  %343 = vmatpush.msra.mxu3 %v170_v34  ;;  %324 = vmatpush.msra.mxu2 %v136_v36  ;;  %v107_v36 = vld [vmem:[#allocation5 + $0x178] sm:$0xff] }
  0x22   :  { %303 = vmatpush.msra.mxu1 %v106_v35  ;;  %v134_v40 = vld [vmem:[#allocation5 + $0x250] sm:$0xff]  ;;  %284 = vmatpush.msra.mxu0 %v72_v37  ;;  %v132_v44 = vld [vmem:[#allocation5 + $0x240] sm:$0xff]  ;;  %v73_v35 = vld [vmem:[#allocation5 + $0x68] sm:$0xff] }
  0x23   :  { %v70_v41 = vld [vmem:[#allocation5 + $0x50] sm:$0xff]  ;;  %344 = vmatpush.msra.mxu3 %v168_v38  ;;  %v68_v45 = vld [vmem:[#allocation5 + $0x40] sm:$0xff]  ;;  %325 = vmatpush.msra.mxu2 %v134_v40  ;;  %v71_v40 = vld [vmem:[#allocation5 + $0x58] sm:$0xff] }
  0x24   :  { %v166_v42 = vld [vmem:[#allocation5 + $0x350] sm:$0xff]  ;;  %304 = vmatpush.msra.mxu1 %v104_v39  ;;  %285 = vmatpush.msra.mxu0 %v70_v41  ;;  %v164_v46 = vld [vmem:[#allocation5 + $0x340] sm:$0xff]  ;;  %v59_v39 = vld [vmem:[#allocation2 + $0x8] sm:$0xf] }
  0x25   :  { %v102_v43 = vld [vmem:[#allocation5 + $0x150] sm:$0xff]  ;;  %v100_v47 = vld [vmem:[#allocation5 + $0x140] sm:$0xff]  ;;  %345 = vmatpush.msra.mxu3 %v166_v42  ;;  %326 = vmatpush.msra.mxu2 %v132_v44  ;;  %v105_v41 = vld [vmem:[#allocation5 + $0x168] sm:$0xff]  ;;  %262 = vst [vmem:[#allocation1 + $0x20] ss:$4 sm:$0xff] %v59_v39 }
  0x26   :  { %305 = vmatpush.msra.mxu1 %v102_v43  ;;  %v130_v48 = vld [vmem:[#allocation5 + $0x230] sm:$0xff]  ;;  %286 = vmatpush.msra.mxu0 %v68_v45  ;;  %v128_v52 = vld [vmem:[#allocation5 + $0x220] sm:$0xff]  ;;  %v69_v44 = vld [vmem:[#allocation5 + $0x48] sm:$0xff] }
  0x27   :  { %v66_v49 = vld [vmem:[#allocation5 + $0x30] sm:$0xff]  ;;  %346 = vmatpush.msra.mxu3 %v164_v46  ;;  %v64_v53 = vld [vmem:[#allocation5 + $0x20] sm:$0xff]  ;;  %327 = vmatpush.msra.mxu2 %v130_v48  ;;  %v103_v45 = vld [vmem:[#allocation5 + $0x158] sm:$0xff] }
  0x28   :  { %v162_v50 = vld [vmem:[#allocation5 + $0x330] sm:$0xff]  ;;  %306 = vmatpush.msra.mxu1 %v100_v47  ;;  %287 = vmatpush.msra.mxu0 %v66_v49  ;;  %v160_v54 = vld [vmem:[#allocation5 + $0x320] sm:$0xff]  ;;  %v67_v48 = vld [vmem:[#allocation5 + $0x38] sm:$0xff] }
  0x29   :  { %v98_v51 = vld [vmem:[#allocation5 + $0x130] sm:$0xff]  ;;  %v96_v55 = vld [vmem:[#allocation5 + $0x120] sm:$0xff]  ;;  %347 = vmatpush.msra.mxu3 %v162_v50  ;;  %328 = vmatpush.msra.mxu2 %v128_v52  ;;  %v101_v49 = vld [vmem:[#allocation5 + $0x148] sm:$0xff] }
  0x2a   :  { %307 = vmatpush.msra.mxu1 %v98_v51  ;;  %v126_v56 = vld [vmem:[#allocation5 + $0x210] sm:$0xff]  ;;  %288 = vmatpush.msra.mxu0 %v64_v53  ;;  %v124_v60 = vld [vmem:[#allocation5 + $0x200] sm:$0xff]  ;;  %v65_v52 = vld [vmem:[#allocation5 + $0x28] sm:$0xff] }
  0x2b   :  { %v62_v57 = vld [vmem:[#allocation5 + $0x10] sm:$0xff]  ;;  %348 = vmatpush.msra.mxu3 %v160_v54  ;;  %v60_v61 = vld [vmem:[#allocation5] sm:$0xff]  ;;  %329 = vmatpush.msra.mxu2 %v126_v56  ;;  %v99_v53 = vld [vmem:[#allocation5 + $0x138] sm:$0xff] }
  0x2c   :  { %v158_v58 = vld [vmem:[#allocation5 + $0x310] sm:$0xff]  ;;  %308 = vmatpush.msra.mxu1 %v96_v55  ;;  %289 = vmatpush.msra.mxu0 %v62_v57  ;;  %v156_v63 = vld [vmem:[#allocation5 + $0x300] sm:$0xff]  ;;  %v63_v56 = vld [vmem:[#allocation5 + $0x18] sm:$0xff] }
  0x2d   :  { %v94_v59 = vld [vmem:[#allocation5 + $0x110] sm:$0xff]  ;;  %349 = vmatpush.msra.mxu3 %v158_v58  ;;  %330 = vmatpush.msra.mxu2 %v124_v60  ;;  %v92_v3 = vld [vmem:[#allocation5 + $0x100] sm:$0xff]  ;;  %v97_v57 = vld [vmem:[#allocation5 + $0x128] sm:$0xff] }
  0x2e   :  { %309 = vmatpush.msra.mxu1 %v94_v59  ;;  %v218_v0 = vld [vmem:[#allocation5 + $0x4f0] sm:$0xff]  ;;  %290 = vmatpush.msra.mxu0 %v60_v61  ;;  %v216_v4 = vld [vmem:[#allocation5 + $0x4e0] sm:$0xff]  ;;  %v61_v60 = vld [vmem:[#allocation5 + $0x8] sm:$0xff] }
  0x2f   :  { %395 = vmatpush.msrb.mxu2 %v91_v62  ;;  %350 = vmatpush.msra.mxu3 %v156_v63  ;;  %v250_v5 = vld [vmem:[#allocation5 + $0x5f0] sm:$0xff]  ;;  %v248_v9 = vld [vmem:[#allocation5 + $0x5e0] sm:$0xff]  ;;  %v95_v61 = vld [vmem:[#allocation5 + $0x118] sm:$0xff] }
  0x30   :  { %355 = vmatpush.msrb.mxu0 %v218_v0  ;;  %310 = vmatpush.msra.mxu1 %v92_v3  ;;  %v214_v8 = vld [vmem:[#allocation5 + $0x4d0] sm:$0xff]  ;;  %v212_v12 = vld [vmem:[#allocation5 + $0x4c0] sm:$0xff]  ;;  %v219_v0 = vld [vmem:[#allocation5 + $0x4f8] sm:$0xff] }
  0x31   :  { %415 = vmatpush.msrb.mxu3 %v123_v1  ;;  %396 = vmatpush.msrb.mxu2 %v89_v2  ;;  %v246_v13 = vld [vmem:[#allocation5 + $0x5d0] sm:$0xff]  ;;  %v244_v17 = vld [vmem:[#allocation5 + $0x5c0] sm:$0xff]  ;;  %v93_v2 = vld [vmem:[#allocation5 + $0x108] sm:$0xff] }
  0x32   :  { %356 = vmatpush.msrb.mxu0 %v216_v4  ;;  %375 = vmatpush.msrb.mxu1 %v250_v5  ;;  %v210_v16 = vld [vmem:[#allocation5 + $0x4b0] sm:$0xff]  ;;  %v208_v20 = vld [vmem:[#allocation5 + $0x4a0] sm:$0xff]  ;;  %v155_v5 = vld [vmem:[#allocation5 + $0x2f8] sm:$0xff] }
  0x33   :  { %397 = vmatpush.msrb.mxu2 %v87_v6  ;;  %416 = vmatpush.msrb.mxu3 %v121_v7  ;;  %v242_v21 = vld [vmem:[#allocation5 + $0x5b0] sm:$0xff]  ;;  %v240_v26 = vld [vmem:[#allocation5 + $0x5a0] sm:$0xff]  ;;  %v217_v6 = vld [vmem:[#allocation5 + $0x4e8] sm:$0xff] }
  0x34   :  { %357 = vmatpush.msrb.mxu0 %v214_v8  ;;  %376 = vmatpush.msrb.mxu1 %v248_v9  ;;  %v58_v24 = vld [vmem:[#allocation2] sm:$0xff]  ;;  %v204_v29 = vld [vmem:[#allocation5 + $0x480] sm:$0xff]  ;;  %v153_v9 = vld [vmem:[#allocation5 + $0x2e8] sm:$0xff] }
  0x35   :  { %398 = vmatpush.msrb.mxu2 %v85_v10  ;;  %417 = vmatpush.msrb.mxu3 %v119_v11  ;;  %v206_v25 = vld [vmem:[#allocation5 + $0x490] sm:$0xff]  ;;  %260 = vst [vmem:[#allocation1] ss:$4 sm:$0xff] %v58_v24  ;;  %v236_v34 = vld [vmem:[#allocation5 + $0x580] sm:$0xff]  ;;  %v251_v7 = vld [vmem:[#allocation5 + $0x5f8] sm:$0xff] }
  0x36   :  { %358 = vmatpush.msrb.mxu0 %v212_v12  ;;  %377 = vmatpush.msrb.mxu1 %v246_v13  ;;  %v238_v30 = vld [vmem:[#allocation5 + $0x590] sm:$0xff]  ;;  %v200_v37 = vld [vmem:[#allocation5 + $0x460] sm:$0xff]  ;;  %v215_v11 = vld [vmem:[#allocation5 + $0x4d8] sm:$0xff] }
  0x37   :  { %399 = vmatpush.msrb.mxu2 %v83_v14  ;;  %418 = vmatpush.msrb.mxu3 %v117_v15  ;;  %v202_v33 = vld [vmem:[#allocation5 + $0x470] sm:$0xff]  ;;  %v232_v43 = vld [vmem:[#allocation5 + $0x560] sm:$0xff]  ;;  %v187_v12 = vld [vmem:[#allocation5 + $0x3f8] sm:$0xff] }
  0x38   :  { %359 = vmatpush.msrb.mxu0 %v210_v16  ;;  %378 = vmatpush.msrb.mxu1 %v244_v17  ;;  %v234_v38 = vld [vmem:[#allocation5 + $0x570] sm:$0xff]  ;;  %v196_v46 = vld [vmem:[#allocation5 + $0x440] sm:$0xff]  ;;  %v249_v13 = vld [vmem:[#allocation5 + $0x5e8] sm:$0xff] }
  0x39   :  { %400 = vmatpush.msrb.mxu2 %v81_v18  ;;  %419 = vmatpush.msrb.mxu3 %v115_v19  ;;  %v198_v42 = vld [vmem:[#allocation5 + $0x450] sm:$0xff]  ;;  %v228_v51 = vld [vmem:[#allocation5 + $0x540] sm:$0xff]  ;;  %v151_v14 = vld [vmem:[#allocation5 + $0x2d8] sm:$0xff] }
  0x3a   :  { %360 = vmatpush.msrb.mxu0 %v208_v20  ;;  %379 = vmatpush.msrb.mxu1 %v242_v21  ;;  %v230_v47 = vld [vmem:[#allocation5 + $0x550] sm:$0xff]  ;;  %v192_v54 = vld [vmem:[#allocation5 + $0x420] sm:$0xff]  ;;  %v213_v15 = vld [vmem:[#allocation5 + $0x4c8] sm:$0xff] }
  0x3b   :  { %401 = vmatpush.msrb.mxu2 %v79_v22  ;;  %420 = vmatpush.msrb.mxu3 %v113_v23  ;;  %v194_v50 = vld [vmem:[#allocation5 + $0x430] sm:$0xff]  ;;  %v224_v59 = vld [vmem:[#allocation5 + $0x520] sm:$0xff]  ;;  %v185_v16 = vld [vmem:[#allocation5 + $0x3e8] sm:$0xff] }
  0x3c   :  { %361 = vmatpush.msrb.mxu0 %v206_v25  ;;  %380 = vmatpush.msrb.mxu1 %v240_v26  ;;  %v226_v55 = vld [vmem:[#allocation5 + $0x530] sm:$0xff]  ;;  %v683_v62 = vld.sshfl [vmem:[#allocation1 + $0x10] sm:$0xff pattern:$0x73625140]  ;;  %v149_v18 = vld [vmem:[#allocation5 + $0x2c8] sm:$0xff] }
  0x3d   :  { %402 = vmatpush.msrb.mxu2 %v77_v27  ;;  %421 = vmatpush.msrb.mxu3 %v111_v28  ;;  %v190_v58 = vld [vmem:[#allocation5 + $0x410] sm:$0xff]  ;;  %v188_v63 = vld [vmem:[#allocation5 + $0x400] sm:$0xff]  ;;  %v247_v17 = vld [vmem:[#allocation5 + $0x5d8] sm:$0xff] }
  0x3e   :  { %362 = vmatpush.msrb.mxu0 %v204_v29  ;;  %381 = vmatpush.msrb.mxu1 %v238_v30  ;;  %v222_v1 = vld [vmem:[#allocation5 + $0x510] sm:$0xff]  ;;  %v688_v4 = vld.sshfl [vmem:[#allocation1 + $0x18] sm:$0xff pattern:$0x73625140]  ;;  %v211_v19 = vld [vmem:[#allocation5 + $0x4b8] sm:$0xff] }
  0x3f   :  { %403 = vmatpush.msrb.mxu2 %v75_v31  ;;  %422 = vmatpush.msrb.mxu3 %v109_v32  ;;  %v685_v3 = vld.sshfl [vmem:[#allocation1] sm:$0xff pattern:$0x73625140]  ;;  %v220_v8 = vld [vmem:[#allocation5 + $0x500] sm:$0xff]  ;;  %v183_v20 = vld [vmem:[#allocation5 + $0x3d8] sm:$0xff] }
  0x40   :  { %363 = vmatpush.msrb.mxu0 %v202_v33  ;;  %382 = vmatpush.msrb.mxu1 %v236_v34  ;;  %v692_v10 = vld.sshfl [vmem:[#allocation1 + $0x8] sm:$0xff pattern:$0x73625140]  ;;  %v245_v21 = vld [vmem:[#allocation5 + $0x5c8] sm:$0xff] }
  0x41   :  { %404 = vmatpush.msrb.mxu2 %v73_v35  ;;  %423 = vmatpush.msrb.mxu3 %v107_v36  ;;  %v695_v22 = vld.sshfl [vmem:[#allocation1 + $0x20] sm:$0xff pattern:$0x73625140]  ;;  %v147_v24 = vld [vmem:[#allocation5 + $0x2b8] sm:$0xff] }
  0x42   :  { %364 = vmatpush.msrb.mxu0 %v200_v37  ;;  %383 = vmatpush.msrb.mxu1 %v234_v38  ;;  %v209_v23 = vld [vmem:[#allocation5 + $0x4a8] sm:$0xff]  ;;  %v243_v26 = vld [vmem:[#allocation5 + $0x5b8] sm:$0xff] }
  0x43   :  { %405 = vmatpush.msrb.mxu2 %v71_v40  ;;  %424 = vmatpush.msrb.mxu3 %v105_v41  ;;  %v181_v25 = vld [vmem:[#allocation5 + $0x3c8] sm:$0xff]  ;;  %v697_v27 = vld.sshfl [vmem:[#allocation1 + $0x28] sm:$0xff pattern:$0x73625140] }
  0x44   :  { %365 = vmatpush.msrb.mxu0 %v198_v42  ;;  %384 = vmatpush.msrb.mxu1 %v232_v43  ;;  %v145_v28 = vld [vmem:[#allocation5 + $0x2a8] sm:$0xff]  ;;  %v179_v29 = vld [vmem:[#allocation5 + $0x3b8] sm:$0xff] }
  0x45   :  { %406 = vmatpush.msrb.mxu2 %v69_v44  ;;  %425 = vmatpush.msrb.mxu3 %v103_v45  ;;  %v207_v30 = vld [vmem:[#allocation5 + $0x498] sm:$0xff]  ;;  %v241_v31 = vld [vmem:[#allocation5 + $0x5a8] sm:$0xff] }
  0x46   :  { %366 = vmatpush.msrb.mxu0 %v196_v46  ;;  %385 = vmatpush.msrb.mxu1 %v230_v47  ;;  %v143_v32 = vld [vmem:[#allocation5 + $0x298] sm:$0xff]  ;;  %v177_v33 = vld [vmem:[#allocation5 + $0x3a8] sm:$0xff] }
  0x47   :  { %407 = vmatpush.msrb.mxu2 %v67_v48  ;;  %426 = vmatpush.msrb.mxu3 %v101_v49  ;;  %v205_v34 = vld [vmem:[#allocation5 + $0x488] sm:$0xff]  ;;  %v239_v35 = vld [vmem:[#allocation5 + $0x598] sm:$0xff] }
  0x48   :  { %367 = vmatpush.msrb.mxu0 %v194_v50  ;;  %386 = vmatpush.msrb.mxu1 %v228_v51  ;;  %v141_v36 = vld [vmem:[#allocation5 + $0x288] sm:$0xff]  ;;  %v175_v37 = vld [vmem:[#allocation5 + $0x398] sm:$0xff] }
  0x49   :  { %408 = vmatpush.msrb.mxu2 %v65_v52  ;;  %427 = vmatpush.msrb.mxu3 %v99_v53  ;;  %v203_v38 = vld [vmem:[#allocation5 + $0x478] sm:$0xff]  ;;  %v237_v39 = vld [vmem:[#allocation5 + $0x588] sm:$0xff] }
  0x4a   :  { %368 = vmatpush.msrb.mxu0 %v192_v54  ;;  %387 = vmatpush.msrb.mxu1 %v226_v55  ;;  %v139_v40 = vld [vmem:[#allocation5 + $0x278] sm:$0xff]  ;;  %v173_v41 = vld [vmem:[#allocation5 + $0x388] sm:$0xff] }
  0x4b   :  { %409 = vmatpush.msrb.mxu2 %v63_v56  ;;  %428 = vmatpush.msrb.mxu3 %v97_v57  ;;  %v201_v42 = vld [vmem:[#allocation5 + $0x468] sm:$0xff]  ;;  %v235_v43 = vld [vmem:[#allocation5 + $0x578] sm:$0xff] }
  0x4c   :  { %369 = vmatpush.msrb.mxu0 %v190_v58  ;;  %388 = vmatpush.msrb.mxu1 %v224_v59  ;;  %v137_v44 = vld [vmem:[#allocation5 + $0x268] sm:$0xff]  ;;  %v171_v45 = vld [vmem:[#allocation5 + $0x378] sm:$0xff] }
  0x4d   :  { %410 = vmatpush.msrb.mxu2 %v61_v60  ;;  %429 = vmatpush.msrb.mxu3 %v95_v61  ;;  %v199_v46 = vld [vmem:[#allocation5 + $0x458] sm:$0xff]  ;;  %v233_v47 = vld [vmem:[#allocation5 + $0x568] sm:$0xff] }
  0x4e   :  { %331 = vmatmul.f32.vlgmr.msra.gmra.mxu2 %v683_v62  ;;  %370 = vmatpush.msrb.mxu0 %v188_v63  ;;  %v135_v48 = vld [vmem:[#allocation5 + $0x258] sm:$0xff]  ;;  %v169_v49 = vld [vmem:[#allocation5 + $0x368] sm:$0xff] }
  0x4f   :  { %475 = vmatpush.msra.mxu2 %v219_v0  ;;  %389 = vmatpush.msrb.mxu1 %v222_v1  ;;  %v197_v50 = vld [vmem:[#allocation5 + $0x448] sm:$0xff]  ;;  %v231_v51 = vld [vmem:[#allocation5 + $0x558] sm:$0xff] }
  0x50   :  { %430 = vmatpush.msrb.mxu3 %v93_v2  ;;  %291 = vmatmul.f32.vlgmr.msra.gmra.mxu0 %v685_v3  ;;  %v133_v52 = vld [vmem:[#allocation5 + $0x248] sm:$0xff]  ;;  %v167_v53 = vld [vmem:[#allocation5 + $0x358] sm:$0xff] }
  0x51   :  { %351 = vmatmul.f32.vlgmr.msra.gmra.mxu3 %v688_v4  ;;  %435 = vmatpush.msra.mxu0 %v155_v5  ;;  %v195_v54 = vld [vmem:[#allocation5 + $0x438] sm:$0xff]  ;;  %v229_v55 = vld [vmem:[#allocation5 + $0x548] sm:$0xff] }
  0x52   :  { %476 = vmatpush.msra.mxu2 %v217_v6  ;;  %495 = vmatpush.msra.mxu3 %v251_v7  ;;  %v131_v56 = vld [vmem:[#allocation5 + $0x238] sm:$0xff]  ;;  %v165_v57 = vld [vmem:[#allocation5 + $0x348] sm:$0xff] }
  0x53   :  { %390 = vmatpush.msrb.mxu1 %v220_v8  ;;  %436 = vmatpush.msra.mxu0 %v153_v9  ;;  %v193_v58 = vld [vmem:[#allocation5 + $0x428] sm:$0xff]  ;;  %v227_v59 = vld [vmem:[#allocation5 + $0x538] sm:$0xff] }
  0x54   :  { %311 = vmatmul.f32.vlgmr.msra.gmra.mxu1 %v692_v10  ;;  %477 = vmatpush.msra.mxu2 %v215_v11  ;;  %v129_v60 = vld [vmem:[#allocation5 + $0x228] sm:$0xff]  ;;  %v163_v61 = vld [vmem:[#allocation5 + $0x338] sm:$0xff] }
  0x55   :  { %455 = vmatpush.msra.mxu1 %v187_v12  ;;  %496 = vmatpush.msra.mxu3 %v249_v13  ;;  %v191_v63 = vld [vmem:[#allocation5 + $0x418] sm:$0xff]  ;;  %v225_v0 = vld [vmem:[#allocation5 + $0x528] sm:$0xff] }
  0x56   :  { %437 = vmatpush.msra.mxu0 %v151_v14  ;;  %478 = vmatpush.msra.mxu2 %v213_v15  ;;  %v127_v1 = vld [vmem:[#allocation5 + $0x218] sm:$0xff]  ;;  %v161_v2 = vld [vmem:[#allocation5 + $0x328] sm:$0xff] }
  0x57   :  { %456 = vmatpush.msra.mxu1 %v185_v16  ;;  %497 = vmatpush.msra.mxu3 %v247_v17  ;;  %v223_v5 = vld [vmem:[#allocation5 + $0x518] sm:$0xff]  ;;  %v125_v6 = vld [vmem:[#allocation5 + $0x208] sm:$0xff] }
  0x58   :  { %438 = vmatpush.msra.mxu0 %v149_v18  ;;  %479 = vmatpush.msra.mxu2 %v211_v19  ;;  %v159_v7 = vld [vmem:[#allocation5 + $0x318] sm:$0xff]  ;;  %v221_v8 = vld [vmem:[#allocation5 + $0x508] sm:$0xff] }
  0x59   :  { %457 = vmatpush.msra.mxu1 %v183_v20  ;;  %498 = vmatpush.msra.mxu3 %v245_v21  ;;  %v157_v9 = vld [vmem:[#allocation5 + $0x308] sm:$0xff] }
  0x5a   :  { %371 = vmatmul.f32.vlgmr.msrb.gmra.mxu0 %v695_v22  ;;  %480 = vmatpush.msra.mxu2 %v209_v23 }
  0x5b   :  { %439 = vmatpush.msra.mxu0 %v147_v24  ;;  %458 = vmatpush.msra.mxu1 %v181_v25 }
  0x5c   :  { %499 = vmatpush.msra.mxu3 %v243_v26  ;;  %391 = vmatmul.f32.vlgmr.msrb.gmra.mxu1 %v697_v27 }
  0x5d   :  { %440 = vmatpush.msra.mxu0 %v145_v28  ;;  %459 = vmatpush.msra.mxu1 %v179_v29 }
  0x5e   :  { %481 = vmatpush.msra.mxu2 %v207_v30  ;;  %500 = vmatpush.msra.mxu3 %v241_v31 }
  0x5f   :  { %441 = vmatpush.msra.mxu0 %v143_v32  ;;  %460 = vmatpush.msra.mxu1 %v177_v33 }
  0x60   :  { %482 = vmatpush.msra.mxu2 %v205_v34  ;;  %501 = vmatpush.msra.mxu3 %v239_v35 }
  0x61   :  { %442 = vmatpush.msra.mxu0 %v141_v36  ;;  %461 = vmatpush.msra.mxu1 %v175_v37 }
  0x62   :  { %483 = vmatpush.msra.mxu2 %v203_v38  ;;  %502 = vmatpush.msra.mxu3 %v237_v39 }
  0x63   :  { %443 = vmatpush.msra.mxu0 %v139_v40  ;;  %462 = vmatpush.msra.mxu1 %v173_v41 }
  0x64   :  { %484 = vmatpush.msra.mxu2 %v201_v42  ;;  %503 = vmatpush.msra.mxu3 %v235_v43 }
  0x65   :  { %444 = vmatpush.msra.mxu0 %v137_v44  ;;  %463 = vmatpush.msra.mxu1 %v171_v45 }
  0x66   :  { %485 = vmatpush.msra.mxu2 %v199_v46  ;;  %504 = vmatpush.msra.mxu3 %v233_v47 }
  0x67   :  { %445 = vmatpush.msra.mxu0 %v135_v48  ;;  %464 = vmatpush.msra.mxu1 %v169_v49 }
  0x68   :  { %486 = vmatpush.msra.mxu2 %v197_v50  ;;  %505 = vmatpush.msra.mxu3 %v231_v51 }
  0x69   :  { %411 = vmatmul.f32.vlgmr.msrb.gmra.mxu2 %v685_v3  ;;  %446 = vmatpush.msra.mxu0 %v133_v52  ;;  %v189_v3 = vld [vmem:[#allocation5 + $0x408] sm:$0xff] }
  0x6a   :  { %465 = vmatpush.msra.mxu1 %v167_v53  ;;  %487 = vmatpush.msra.mxu2 %v195_v54 }
  0x6b   :  { %506 = vmatpush.msra.mxu3 %v229_v55  ;;  %447 = vmatpush.msra.mxu0 %v131_v56 }
  0x6c   :  { %431 = vmatmul.f32.vlgmr.msrb.gmra.mxu3 %v692_v10  ;;  %466 = vmatpush.msra.mxu1 %v165_v57  ;;  %v252_v10 = vld [vmem:[#allocation7] sm:$0x3] }
  0x6d   :  { %488 = vmatpush.msra.mxu2 %v193_v58  ;;  %507 = vmatpush.msra.mxu3 %v227_v59  ;;  %v254_v13 = vperm.slane %v252_v10, 0  ;;  %v255_v18 = vperm.slane %v252_v10, 1 }
  0x6e   :  { %448 = vmatpush.msra.mxu0 %v129_v60  ;;  %467 = vmatpush.msra.mxu1 %v163_v61 }
  0x6f   :  { %489 = vmatpush.msra.mxu2 %v191_v63  ;;  %508 = vmatpush.msra.mxu3 %v225_v0 }
  0x70   :  { %449 = vmatpush.msra.mxu0 %v127_v1  ;;  %468 = vmatpush.msra.mxu1 %v161_v2 }
  0x71   :  { %490 = vmatpush.msra.mxu2 %v189_v3  ;;  %509 = vmatpush.msra.mxu3 %v223_v5 }
  0x72   :  { %491 = vmatmul.f32.vlgmr.msra.gmra.mxu2 %v695_v22  ;;  %450 = vmatpush.msra.mxu0 %v125_v6 }
  0x73   :  { %469 = vmatpush.msra.mxu1 %v159_v7  ;;  %510 = vmatpush.msra.mxu3 %v221_v8 }
  0x74   :  { %451 = vmatmul.f32.vlgmr.msra.gmra.mxu0 %v683_v62  ;;  %511 = vmatmul.f32.vlgmr.msra.gmra.mxu3 %v697_v27 }
  0x75   :  { %470 = vmatpush.msra.mxu1 %v157_v9 }
  0x76   :  { %471 = vmatmul.f32.vlgmr.msra.gmra.mxu1 %v688_v4 }
  0xcd   :  { %v292_v11 = vpop.f32.mrf.mxu0 }
  0xce   :  { %v293_v15 = vadd.f32 %v292_v11, %v254_v13 }
  0xd1   :  { %v312_v12 = vpop.f32.mrf.mxu1  ;;  %v332_v14 = vpop.f32.mrf.mxu2 }
  0xd2   :  { %v313_v19 = vadd.f32 %v312_v12, %v293_v15 }
  0xd4   :  { %v352_v16 = vpop.f32.mrf.mxu3  ;;  %v333_v23 = vadd.f32 %v332_v14, %v313_v19 }
  0xd6   :  { %v353_v26 = vadd.f32 %v352_v16, %v333_v23 }
  0xd7   :  { %v372_v17 = vpop.f32.mrf.mxu0 }
  0xd8   :  { %v373_v30 = vadd.f32 %v372_v17, %v353_v26 }
  0xd9   :  { %v392_v20 = vpop.f32.mrf.mxu1 }
  0xda   :  { %v393_v34 = vadd.f32 %v392_v20, %v373_v30 }
  0xec   :  { %v412_v21 = vpop.f32.mrf.mxu2 }
  0xed   :  { %v413_v22 = vadd.f32 %v412_v21, %v255_v18 }
  0xef   :  { %v432_v62 = vpop.f32.mrf.mxu3 }
  0xf0   :  { %v433_v24 = vadd.f32 %v432_v62, %v413_v22 }
  0xf1   :  { %v452_v25 = vpop.f32.mrf.mxu0 }
  0xf2   :  { %v453_v27 = vadd.f32 %v452_v25, %v433_v24 }
  0xf3   :  { %v472_v4 = vpop.f32.mrf.mxu1 }
  0xf4   :  { %v473_v28 = vadd.f32 %v472_v4, %v453_v27 }
  0xf5   :  { %v492_v29 = vpop.f32.mrf.mxu2 }
  0xf6   :  { %v493_v31 = vadd.f32 %v492_v29, %v473_v28 }
  0xf7   :  { %v512_v32 = vpop.f32.mrf.mxu3 }
  0xf8   :  { %v513_v33 = vadd.f32 %v512_v32, %v493_v31 }
  0xfa   :  { %v517_v35 = vrot.slane %v513_v33, 6 }
  0xfc   :  { %v519_v36 = vsel %vm518_vm0, %v393_v34, %v517_v35 }
  0xfd   :  { %521 = vst [vmem:[#allocation8] sm:$0xf] %v519_v36 }
  0xfe   :  { %532 = dma.vmem_to_hbm [thread:$0]  %s528_s2, 64, %s530_s30, [#allocation4]  }
  0xff   :  { %646 = dma.done.wait [#allocation4], 64  }
 0x100   :  { %647 = vsyncadd [#allocation4], 4294967232 }
 0x101   :  { %537 = vsyncpa [#allocation3], 1 }
 0x102   :  { %538 = vsyncpa [#allocation6], 1 }
 0x103   :  { %539 = vsyncpa [#allocation4], 1 }

</bundles_post_ra>
